<compile_context>
chip_gen: v6e
topology: v6e:2x2x1
jax: 0.10.0
libtpu: 0.0.40
codegen_flags: <defaults>
</compile_context>

<pallas_src>
import functools

import jax
import jax.numpy as jnp
from jax.experimental import pallas as pl
from jax.experimental.pallas import tpu as pltpu


# ----------------------------------------------------------------------------
# helpers
# ----------------------------------------------------------------------------
def _row_tile(m, pref=256):
    for t in (pref, 128, 64, 32, 16, 8):
        if t <= m and m % t == 0:
            return t
    return m


def _pick_chunk(s, pref=8):
    for t in (pref, 8, 4, 2, 1):
        if t <= s and s % t == 0 and s // t >= 2:
            return t
    return s


# ----------------------------------------------------------------------------
# 1) Hoisted input-gate projection:  G = sum_i x_i @ W_i + b
#    One big (S*B, K) x (K, 4H) matmul per direction, tiled over rows.
#    Multiple input streams -> layer-2 never needs concat([fw, bw]).
# ----------------------------------------------------------------------------
def _make_proj_kernel(n_inputs):
    def kernel(*refs):
        xs = refs[:n_inputs]
        ws = refs[n_inputs:2 * n_inputs]
        b_ref = refs[2 * n_inputs]
        o_ref = refs[2 * n_inputs + 1]
        acc = b_ref[...]                                   # (1, N) broadcasts
        for x_ref, w_ref in zip(xs, ws):
            acc = acc + jnp.dot(x_ref[...].astype(w_ref.dtype), w_ref[...],
                                preferred_element_type=jnp.float32)
        o_ref[...] = acc
    return kernel


def gate_projection(streams_and_weights, bias):
    """streams_and_weights: list of (x2d (M, K_i) f32, w (K_i, N) bf16) -> (M, N) f32."""
    M = streams_and_weights[0][0].shape[0]
    N = bias.shape[-1]
    n = len(streams_and_weights)
    tm = _row_tile(M)

    in_specs, args = [], []
    for x, _ in streams_and_weights:
        in_specs.append(pl.BlockSpec((tm, x.shape[1]), lambda m: (m, 0)))
        args.append(x)
    for _, w in streams_and_weights:
        in_specs.append(pl.BlockSpec((w.shape[0], N), lambda m: (0, 0)))
        args.append(w)
    in_specs.append(pl.BlockSpec((1, N), lambda m: (0, 0)))
    args.append(bias)

    return pl.pallas_call(
        _make_proj_kernel(n),
        out_shape=jax.ShapeDtypeStruct((M, N), jnp.float32),
        grid=(M // tm,),
        in_specs=in_specs,
        out_specs=pl.BlockSpec((tm, N), lambda m: (m, 0)),
        compiler_params=pltpu.CompilerParams(dimension_semantics=("parallel",)),
    )(*args)


# ----------------------------------------------------------------------------
# 2) Fused bidirectional LSTM recurrence.  grid=(S//chunk,); each grid step
#    processes `chunk` timesteps of BOTH directions (fw walks forward, bw walks
#    the mirrored chunk backwards).  Only h @ W_hh + gate math stays inside.
#    PyTorch gate order: i, f, g, o; h0 = c0 = 0.
# ----------------------------------------------------------------------------
def bilstm_chunk_kernel(gf_ref, gb_ref, whh_f_ref, whh_b_ref,
                        of_ref, ob_ref,
                        hf_sc, cf_sc, hb_sc, cb_sc, *, hidden, chunk):
    c = pl.program_id(0)

    @pl.when(c == 0)
    def _():
        hf_sc[...] = jnp.zeros_like(hf_sc)
        cf_sc[...] = jnp.zeros_like(cf_sc)
        hb_sc[...] = jnp.zeros_like(hb_sc)
        cb_sc[...] = jnp.zeros_like(cb_sc)

    whh_f = whh_f_ref[...]
    whh_b = whh_b_ref[...]

    def cell(gates_x, h, c_st, whh):
        gates = gates_x + jnp.dot(h.astype(whh.dtype), whh,
                                  preferred_element_type=jnp.float32)
        i = jax.nn.sigmoid(gates[:, 0 * hidden:1 * hidden])
        f = jax.nn.sigmoid(gates[:, 1 * hidden:2 * hidden])
        g = jnp.tanh(gates[:, 2 * hidden:3 * hidden])
        o = jax.nn.sigmoid(gates[:, 3 * hidden:4 * hidden])
        c_new = f * c_st + i * g
        h_new = o * jnp.tanh(c_new)
        return h_new, c_new

    hf, cf = hf_sc[...], cf_sc[...]
    hb, cb = hb_sc[...], cb_sc[...]
    for j in range(chunk):                 # static unroll over the chunk
        hf, cf = cell(gf_ref[j], hf, cf, whh_f)
        of_ref[j] = hf
        jb = chunk - 1 - j                 # backward dir: reversed within chunk
        hb, cb = cell(gb_ref[jb], hb, cb, whh_b)
        ob_ref[jb] = hb
    hf_sc[...], cf_sc[...] = hf, cf
    hb_sc[...], cb_sc[...] = hb, cb


def bilstm_layer(gates_fw, gates_bw, whh_fw, whh_bw, *, hidden, chunk):
    """gates_*: (S, B, 4H) precomputed x-projections.  Returns fw, bw each (S, B, H)."""
    S, B, G = gates_fw.shape
    nc = S // chunk
    return pl.pallas_call(
        functools.partial(bilstm_chunk_kernel, hidden=hidden, chunk=chunk),
        out_shape=(jax.ShapeDtypeStruct((S, B, hidden), jnp.float32),
                   jax.ShapeDtypeStruct((S, B, hidden), jnp.float32)),
        grid=(nc,),
        in_specs=[
            pl.BlockSpec((chunk, B, G), lambda c: (c, 0, 0)),            # fw gates
            pl.BlockSpec((chunk, B, G), lambda c: (nc - 1 - c, 0, 0)),   # bw gates
            pl.BlockSpec((hidden, G), lambda c: (0, 0)),                 # W_hh fw
            pl.BlockSpec((hidden, G), lambda c: (0, 0)),                 # W_hh bw
        ],
        out_specs=(
            pl.BlockSpec((chunk, B, hidden), lambda c: (c, 0, 0)),
            pl.BlockSpec((chunk, B, hidden), lambda c: (nc - 1 - c, 0, 0)),
        ),
        scratch_shapes=[
            pltpu.VMEM((B, hidden), jnp.float32),   # h fw
            pltpu.VMEM((B, hidden), jnp.float32),   # c fw
            pltpu.VMEM((B, hidden), jnp.float32),   # h bw
            pltpu.VMEM((B, hidden), jnp.float32),   # c bw
        ],
        compiler_params=pltpu.CompilerParams(
            dimension_semantics=("arbitrary",)),    # sequential recurrence
    )(gates_fw, gates_bw, whh_fw, whh_bw)


# ----------------------------------------------------------------------------
# 3) Head: streaming max over the sequence (time-major blocks), ReLU after the
#    max, split classifier matmul (seq / fw / bw halves of W) — no concat and
#    no full (B,S,*) tensors in VMEM.
# ----------------------------------------------------------------------------
def head_kernel(seq_ref, fw_ref, bw_ref, wseq_ref, wfw_ref, wbw_ref, b_ref,
                o_ref, mseq_sc, mfw_sc, mbw_sc):
    s = pl.program_id(0)

    @pl.when(s == 0)
    def _():
        mseq_sc[...] = jnp.full_like(mseq_sc, -jnp.inf)
        mfw_sc[...] = jnp.full_like(mfw_sc, -jnp.inf)
        mbw_sc[...] = jnp.full_like(mbw_sc, -jnp.inf)

    # running max over the leading (sequence) axis — pure elementwise max
    mseq_sc[...] = jnp.maximum(mseq_sc[...], jnp.max(seq_ref[...], axis=0))
    mfw_sc[...] = jnp.maximum(mfw_sc[...], jnp.max(fw_ref[...], axis=0))
    mbw_sc[...] = jnp.maximum(mbw_sc[...], jnp.max(bw_ref[...], axis=0))

    @pl.when(s == pl.num_programs(0) - 1)
    def _():
        # ReLU commutes with max (monotone): relu(max(x)) == max(relu(x)).
        ps = jnp.maximum(mseq_sc[...], 0.0)
        pf = jnp.maximum(mfw_sc[...], 0.0)
        pb = jnp.maximum(mbw_sc[...], 0.0)
        # TODO(synk): dropout(p=0.1) before the classifier — eval-mode identity.
        o_ref[...] = (
            jnp.dot(ps, wseq_ref[...], preferred_element_type=jnp.float32)
            + jnp.dot(pf, wfw_ref[...], preferred_element_type=jnp.float32)
            + jnp.dot(pb, wbw_ref[...], preferred_element_type=jnp.float32)
            + b_ref[...]
        )


def head(seq_tm, fw_tm, bw_tm, clf_w, clf_b, *, tile):
    S, B, E = seq_tm.shape
    H = fw_tm.shape[-1]
    C = clf_w.shape[-1]
    w_seq, w_fw, w_bw = clf_w[:E], clf_w[E:E + H], clf_w[E + H:]
    return pl.pallas_call(
        head_kernel,
        out_shape=jax.ShapeDtypeStruct((B, C), jnp.float32),
        grid=(S // tile,),
        in_specs=[
            pl.BlockSpec((tile, B, E), lambda s: (s, 0, 0)),
            pl.BlockSpec((tile, B, H), lambda s: (s, 0, 0)),
            pl.BlockSpec((tile, B, H), lambda s: (s, 0, 0)),
            pl.BlockSpec((E, C), lambda s: (0, 0)),
            pl.BlockSpec((H, C), lambda s: (0, 0)),
            pl.BlockSpec((H, C), lambda s: (0, 0)),
            pl.BlockSpec((1, C), lambda s: (0, 0)),
        ],
        out_specs=pl.BlockSpec((B, C), lambda s: (0, 0)),
        scratch_shapes=[
            pltpu.VMEM((B, E), jnp.float32),
            pltpu.VMEM((B, H), jnp.float32),
            pltpu.VMEM((B, H), jnp.float32),
        ],
        compiler_params=pltpu.CompilerParams(dimension_semantics=("arbitrary",)),
    )(seq_tm, fw_tm, bw_tm, w_seq, w_fw, w_bw, clf_b)


# ----------------------------------------------------------------------------
# Full forward
# ----------------------------------------------------------------------------
def rcnn_forward(input_ids, params, *, hidden, chunk=None):
    # TODO(synk): transformer backbone (AutoModel) not reproducible — replaced
    # by a deterministic embedding lookup producing seq_output.
    B, S = input_ids.shape
    chunk = chunk or _pick_chunk(S)

    # time-major (S, B, .) end-to-end — no batch-major transposes needed.
    seq_tm = jnp.take(params["embedding"], input_ids.T, axis=0)     # (S, B, E)

    streams = [seq_tm.reshape(S * B, -1)]
    fw = bw = None
    for layer in params["lstm"]:
        gates = {}
        for d in ("fw", "bw"):
            wih, bias = layer[d]["wih"], layer[d]["bias"]
            pairs, off = [], 0
            for x2d in streams:
                k = x2d.shape[1]
                pairs.append((x2d, wih[off:off + k]))
                off += k
            gates[d] = gate_projection(pairs, bias).reshape(S, B, -1)
        fw, bw = bilstm_layer(gates["fw"], gates["bw"],
                              layer["fw"]["whh"], layer["bw"]["whh"],
                              hidden=hidden, chunk=chunk)
        # TODO(synk): inter-layer dropout (p=0.3) — eval-mode identity.
        streams = [fw.reshape(S * B, hidden), bw.reshape(S * B, hidden)]

    # MaxPool1d(200) in the reference assumes S == 200; implemented as a
    # streaming max over the full sequence.
    return head(seq_tm, fw, bw, params["clf_w"], params["clf_b"], tile=chunk)


def init_params(key, *, vocab, embed, hidden, n_layers, num_classes):
    ks = iter(jax.random.split(key, 64))
    scale = 0.1

    def w(shape, dtype=jnp.float32):
        return (jax.random.normal(next(ks), shape, jnp.float32) * scale).astype(dtype)

    params = {"embedding": w((vocab, embed)), "lstm": []}
    d_in = embed
    for _ in range(n_layers):
        layer = {}
        for d in ("fw", "bw"):
            layer[d] = {
                "wih": w((d_in, 4 * hidden), jnp.bfloat16),      # = weight_ih^T (MXU operand)
                "whh": w((hidden, 4 * hidden), jnp.bfloat16),    # = weight_hh^T (MXU operand)
                "bias": w((1, 4 * hidden)) + w((1, 4 * hidden)), # bias_ih + bias_hh (f32)
            }
        params["lstm"].append(layer)
        d_in = 2 * hidden                                        # bidirectional
    params["clf_w"] = w((2 * hidden + embed, num_classes))       # = classifier.weight^T
    params["clf_b"] = w((1, num_classes))
    return params


if __name__ == "__main__":
    # Small shapes consistent with the module (scaled down from H=256, E=768,
    # S=200): B multiple of 8 (sublane), 4H = 128 (lane-aligned).
    B, S, E, H, C, VOCAB, NLAYERS = 8, 8, 32, 32, 4, 50, 2

    key = jax.random.PRNGKey(0)
    k_param, k_ids = jax.random.split(key)

    params = init_params(k_param, vocab=VOCAB, embed=E, hidden=H,
                         n_layers=NLAYERS, num_classes=C)
    input_ids = jax.random.randint(k_ids, (B, S), 0, VOCAB, dtype=jnp.int32)

    fwd = jax.jit(functools.partial(rcnn_forward, hidden=H))
    logits = fwd(input_ids, params)
    jax.block_until_ready(logits)
    assert logits.shape == (B, C) and logits.dtype == jnp.float32
    print("KERNEL_OK")
</pallas_src>

<mosaic_0001>
module attributes {stable_mosaic.version = 11 : i64} {
  func.func @kernel(%arg0: i32, %arg1: memref<64x32xf32, #tpu.memory_space<vmem>>, %arg2: memref<32x128xbf16, #tpu.memory_space<vmem>>, %arg3: memref<1x128xf32, #tpu.memory_space<vmem>>, %arg4: memref<64x128xf32, #tpu.memory_space<vmem>>) attributes {dimension_semantics = [#tpu.dimension_semantics<parallel>], iteration_bounds = array<i64: 1>, scalar_prefetch = 0 : i64, scratch_operands = 0 : i64, tpu.core_type = #tpu.core_type<tc>, window_params = [{transform_indices = @transform_0, window_bounds = array<i64: 64, 32>}, {pipeline_mode = #tpu.pipeline_mode<synchronous>, transform_indices = @transform_1, window_bounds = array<i64: 32, 128>}, {pipeline_mode = #tpu.pipeline_mode<synchronous>, transform_indices = @transform_2, window_bounds = array<i64: 1, 128>}, {transform_indices = @transform_3, window_bounds = array<i64: 64, 128>}]} {
    %c0 = arith.constant 0 : index
    %c0_0 = arith.constant 0 : index
    %0 = vector.load %arg3[%c0, %c0_0] : memref<1x128xf32, #tpu.memory_space<vmem>>, vector<1x128xf32>
    %c0_1 = arith.constant 0 : index
    %c0_2 = arith.constant 0 : index
    %1 = vector.load %arg1[%c0_1, %c0_2] : memref<64x32xf32, #tpu.memory_space<vmem>>, vector<64x32xf32>
    %2 = arith.truncf %1 : vector<64x32xf32> to vector<64x32xbf16>
    %c0_3 = arith.constant 0 : index
    %c0_4 = arith.constant 0 : index
    %3 = vector.load %arg2[%c0_3, %c0_4] : memref<32x128xbf16, #tpu.memory_space<vmem>>, vector<32x128xbf16>
    %cst = arith.constant dense<0.000000e+00> : vector<64x128xf32>
    %4 = tpu.matmul %2, %3, %cst {dimension_numbers = #tpu.dot_dimension_numbers<[1], [0], [0], [1], [0, 0, 1, 1], [], []>} : vector<64x32xbf16>, vector<32x128xbf16>, vector<64x128xf32> -> vector<64x128xf32>
    %5 = vector.broadcast %0 : vector<1x128xf32> to vector<64x128xf32>
    %6 = arith.addf %5, %4 : vector<64x128xf32>
    %c0_5 = arith.constant 0 : index
    %c0_6 = arith.constant 0 : index
    %7 = vector.load %arg4[%c0_5, %c0_6] : memref<64x128xf32, #tpu.memory_space<vmem>>, vector<64x128xf32>
    tpu.vector_store %arg4[%c0_5, %c0_6], %6 {strides = array<i32>} : memref<64x128xf32, #tpu.memory_space<vmem>>, vector<64x128xf32>,
    return
  }
  func.func @transform_0(%arg0: i32) -> (i32, i32) {
    %c0_i32 = arith.constant 0 : i32
    %c0_i32_0 = arith.constant 0 : i32
    return %arg0, %c0_i32 : i32, i32
  }
  func.func @transform_1(%arg0: i32) -> (i32, i32) {
    %c0_i32 = arith.constant 0 : i32
    %c0_i32_0 = arith.constant 0 : i32
    %c0_i32_1 = arith.constant 0 : i32
    return %c0_i32, %c0_i32_0 : i32, i32
  }
  func.func @transform_2(%arg0: i32) -> (i32, i32) {
    %c0_i32 = arith.constant 0 : i32
    %c0_i32_0 = arith.constant 0 : i32
    %c0_i32_1 = arith.constant 0 : i32
    return %c0_i32, %c0_i32_0 : i32, i32
  }
  func.func @transform_3(%arg0: i32) -> (i32, i32) {
    %c0_i32 = arith.constant 0 : i32
    %c0_i32_0 = arith.constant 0 : i32
    return %arg0, %c0_i32 : i32, i32
  }
}

module attributes {stable_mosaic.version = 11 : i64} {
  func.func @kernel(%arg0: i32, %arg1: memref<64x32xf32, #tpu.memory_space<vmem>>, %arg2: memref<64x32xf32, #tpu.memory_space<vmem>>, %arg3: memref<32x128xbf16, #tpu.memory_space<vmem>>, %arg4: memref<32x128xbf16, #tpu.memory_space<vmem>>, %arg5: memref<1x128xf32, #tpu.memory_space<vmem>>, %arg6: memref<64x128xf32, #tpu.memory_space<vmem>>) attributes {dimension_semantics = [#tpu.dimension_semantics<parallel>], iteration_bounds = array<i64: 1>, scalar_prefetch = 0 : i64, scratch_operands = 0 : i64, tpu.core_type = #tpu.core_type<tc>, window_params = [{transform_indices = @transform_0, window_bounds = array<i64: 64, 32>}, {transform_indices = @transform_1, window_bounds = array<i64: 64, 32>}, {pipeline_mode = #tpu.pipeline_mode<synchronous>, transform_indices = @transform_2, window_bounds = array<i64: 32, 128>}, {pipeline_mode = #tpu.pipeline_mode<synchronous>, transform_indices = @transform_3, window_bounds = array<i64: 32, 128>}, {pipeline_mode = #tpu.pipeline_mode<synchronous>, transform_indices = @transform_4, window_bounds = array<i64: 1, 128>}, {transform_indices = @transform_5, window_bounds = array<i64: 64, 128>}]} {
    %c0 = arith.constant 0 : index
    %c0_0 = arith.constant 0 : index
    %0 = vector.load %arg5[%c0, %c0_0] : memref<1x128xf32, #tpu.memory_space<vmem>>, vector<1x128xf32>
    %c0_1 = arith.constant 0 : index
    %c0_2 = arith.constant 0 : index
    %1 = vector.load %arg1[%c0_1, %c0_2] : memref<64x32xf32, #tpu.memory_space<vmem>>, vector<64x32xf32>
    %2 = arith.truncf %1 : vector<64x32xf32> to vector<64x32xbf16>
    %c0_3 = arith.constant 0 : index
    %c0_4 = arith.constant 0 : index
    %3 = vector.load %arg3[%c0_3, %c0_4] : memref<32x128xbf16, #tpu.memory_space<vmem>>, vector<32x128xbf16>
    %cst = arith.constant dense<0.000000e+00> : vector<64x128xf32>
    %4 = tpu.matmul %2, %3, %cst {dimension_numbers = #tpu.dot_dimension_numbers<[1], [0], [0], [1], [0, 0, 1, 1], [], []>} : vector<64x32xbf16>, vector<32x128xbf16>, vector<64x128xf32> -> vector<64x128xf32>
    %5 = vector.broadcast %0 : vector<1x128xf32> to vector<64x128xf32>
    %6 = arith.addf %5, %4 : vector<64x128xf32>
    %c0_5 = arith.constant 0 : index
    %c0_6 = arith.constant 0 : index
    %7 = vector.load %arg2[%c0_5, %c0_6] : memref<64x32xf32, #tpu.memory_space<vmem>>, vector<64x32xf32>
    %8 = arith.truncf %7 : vector<64x32xf32> to vector<64x32xbf16>
    %c0_7 = arith.constant 0 : index
    %c0_8 = arith.constant 0 : index
    %9 = vector.load %arg4[%c0_7, %c0_8] : memref<32x128xbf16, #tpu.memory_space<vmem>>, vector<32x128xbf16>
    %cst_9 = arith.constant dense<0.000000e+00> : vector<64x128xf32>
    %10 = tpu.matmul %8, %9, %cst_9 {dimension_numbers = #tpu.dot_dimension_numbers<[1], [0], [0], [1], [0, 0, 1, 1], [], []>} : vector<64x32xbf16>, vector<32x128xbf16>, vector<64x128xf32> -> vector<64x128xf32>
    %11 = arith.addf %6, %10 : vector<64x128xf32>
    %c0_10 = arith.constant 0 : index
    %c0_11 = arith.constant 0 : index
    %12 = vector.load %arg6[%c0_10, %c0_11] : memref<64x128xf32, #tpu.memory_space<vmem>>, vector<64x128xf32>
    tpu.vector_store %arg6[%c0_10, %c0_11], %11 {strides = array<i32>} : memref<64x128xf32, #tpu.memory_space<vmem>>, vector<64x128xf32>,
    return
  }
  func.func @transform_0(%arg0: i32) -> (i32, i32) {
    %c0_i32 = arith.constant 0 : i32
    %c0_i32_0 = arith.constant 0 : i32
    return %arg0, %c0_i32 : i32, i32
  }
  func.func @transform_1(%arg0: i32) -> (i32, i32) {
    %c0_i32 = arith.constant 0 : i32
    %c0_i32_0 = arith.constant 0 : i32
    return %arg0, %c0_i32 : i32, i32
  }
  func.func @transform_2(%arg0: i32) -> (i32, i32) {
    %c0_i32 = arith.constant 0 : i32
    %c0_i32_0 = arith.constant 0 : i32
    %c0_i32_1 = arith.constant 0 : i32
    return %c0_i32, %c0_i32_0 : i32, i32
  }
  func.func @transform_3(%arg0: i32) -> (i32, i32) {
    %c0_i32 = arith.constant 0 : i32
    %c0_i32_0 = arith.constant 0 : i32
    %c0_i32_1 = arith.constant 0 : i32
    return %c0_i32, %c0_i32_0 : i32, i32
  }
  func.func @transform_4(%arg0: i32) -> (i32, i32) {
    %c0_i32 = arith.constant 0 : i32
    %c0_i32_0 = arith.constant 0 : i32
    %c0_i32_1 = arith.constant 0 : i32
    return %c0_i32, %c0_i32_0 : i32, i32
  }
  func.func @transform_5(%arg0: i32) -> (i32, i32) {
    %c0_i32 = arith.constant 0 : i32
    %c0_i32_0 = arith.constant 0 : i32
    return %arg0, %c0_i32 : i32, i32
  }
}

module attributes {stable_mosaic.version = 11 : i64} {
  func.func @bilstm_chunk_kernel(%arg0: i32, %arg1: memref<4x8x128xf32, #tpu.memory_space<vmem>>, %arg2: memref<4x8x128xf32, #tpu.memory_space<vmem>>, %arg3: memref<32x128xbf16, #tpu.memory_space<vmem>>, %arg4: memref<32x128xbf16, #tpu.memory_space<vmem>>, %arg5: memref<4x8x32xf32, #tpu.memory_space<vmem>>, %arg6: memref<4x8x32xf32, #tpu.memory_space<vmem>>, %arg7: memref<8x32xf32, #tpu.memory_space<vmem>>, %arg8: memref<8x32xf32, #tpu.memory_space<vmem>>, %arg9: memref<8x32xf32, #tpu.memory_space<vmem>>, %arg10: memref<8x32xf32, #tpu.memory_space<vmem>>) attributes {dimension_semantics = [#tpu.dimension_semantics<arbitrary>], iteration_bounds = array<i64: 2>, scalar_prefetch = 0 : i64, scratch_operands = 4 : i64, tpu.core_type = #tpu.core_type<tc>, window_params = [{transform_indices = @transform_0, window_bounds = array<i64: 4, 8, 128>}, {transform_indices = @transform_1, window_bounds = array<i64: 4, 8, 128>}, {pipeline_mode = #tpu.pipeline_mode<synchronous>, transform_indices = @transform_2, window_bounds = array<i64: 32, 128>}, {pipeline_mode = #tpu.pipeline_mode<synchronous>, transform_indices = @transform_3, window_bounds = array<i64: 32, 128>}, {transform_indices = @transform_4, window_bounds = array<i64: 4, 8, 32>}, {transform_indices = @transform_5, window_bounds = array<i64: 4, 8, 32>}]} {
    %c0_i32 = arith.constant 0 : i32
    %0 = arith.cmpi eq, %arg0, %c0_i32 : i32
    %1 = arith.extui %0 : i1 to i32
    %c0_i32_0 = arith.constant 0 : i32
    %2 = arith.cmpi ne, %1, %c0_i32_0 : i32
    scf.if %2 {
      %cst_96 = arith.constant 0.000000e+00 : f32
      %277 = vector.broadcast %cst_96 : f32 to vector<8x32xf32>
      %c0_97 = arith.constant 0 : index
      %c0_98 = arith.constant 0 : index
      %278 = vector.load %arg7[%c0_97, %c0_98] : memref<8x32xf32, #tpu.memory_space<vmem>>, vector<8x32xf32>
      tpu.vector_store %arg7[%c0_97, %c0_98], %277 {strides = array<i32>} : memref<8x32xf32, #tpu.memory_space<vmem>>, vector<8x32xf32>,
      %cst_99 = arith.constant 0.000000e+00 : f32
      %279 = vector.broadcast %cst_99 : f32 to vector<8x32xf32>
      %c0_100 = arith.constant 0 : index
      %c0_101 = arith.constant 0 : index
      %280 = vector.load %arg8[%c0_100, %c0_101] : memref<8x32xf32, #tpu.memory_space<vmem>>, vector<8x32xf32>
      tpu.vector_store %arg8[%c0_100, %c0_101], %279 {strides = array<i32>} : memref<8x32xf32, #tpu.memory_space<vmem>>, vector<8x32xf32>,
      %cst_102 = arith.constant 0.000000e+00 : f32
      %281 = vector.broadcast %cst_102 : f32 to vector<8x32xf32>
      %c0_103 = arith.constant 0 : index
      %c0_104 = arith.constant 0 : index
      %282 = vector.load %arg9[%c0_103, %c0_104] : memref<8x32xf32, #tpu.memory_space<vmem>>, vector<8x32xf32>
      tpu.vector_store %arg9[%c0_103, %c0_104], %281 {strides = array<i32>} : memref<8x32xf32, #tpu.memory_space<vmem>>, vector<8x32xf32>,
      %cst_105 = arith.constant 0.000000e+00 : f32
      %283 = vector.broadcast %cst_105 : f32 to vector<8x32xf32>
      %c0_106 = arith.constant 0 : index
      %c0_107 = arith.constant 0 : index
      %284 = vector.load %arg10[%c0_106, %c0_107] : memref<8x32xf32, #tpu.memory_space<vmem>>, vector<8x32xf32>
      tpu.vector_store %arg10[%c0_106, %c0_107], %283 {strides = array<i32>} : memref<8x32xf32, #tpu.memory_space<vmem>>, vector<8x32xf32>,
    } else {
    }
    %c0 = arith.constant 0 : index
    %c0_1 = arith.constant 0 : index
    %3 = vector.load %arg3[%c0, %c0_1] : memref<32x128xbf16, #tpu.memory_space<vmem>>, vector<32x128xbf16>
    %c0_2 = arith.constant 0 : index
    %c0_3 = arith.constant 0 : index
    %4 = vector.load %arg4[%c0_2, %c0_3] : memref<32x128xbf16, #tpu.memory_space<vmem>>, vector<32x128xbf16>
    %c0_4 = arith.constant 0 : index
    %c0_5 = arith.constant 0 : index
    %5 = vector.load %arg7[%c0_4, %c0_5] : memref<8x32xf32, #tpu.memory_space<vmem>>, vector<8x32xf32>
    %c0_6 = arith.constant 0 : index
    %c0_7 = arith.constant 0 : index
    %6 = vector.load %arg8[%c0_6, %c0_7] : memref<8x32xf32, #tpu.memory_space<vmem>>, vector<8x32xf32>
    %c0_8 = arith.constant 0 : index
    %c0_9 = arith.constant 0 : index
    %7 = vector.load %arg9[%c0_8, %c0_9] : memref<8x32xf32, #tpu.memory_space<vmem>>, vector<8x32xf32>
    %c0_10 = arith.constant 0 : index
    %c0_11 = arith.constant 0 : index
    %8 = vector.load %arg10[%c0_10, %c0_11] : memref<8x32xf32, #tpu.memory_space<vmem>>, vector<8x32xf32>
    %c0_12 = arith.constant 0 : index
    %c0_13 = arith.constant 0 : index
    %c0_14 = arith.constant 0 : index
    %9 = vector.load %arg1[%c0_12, %c0_13, %c0_14] : memref<4x8x128xf32, #tpu.memory_space<vmem>>, vector<1x8x128xf32>
    %10 = vector.shape_cast %9 : vector<1x8x128xf32> to vector<8x128xf32>
    %11 = arith.truncf %5 : vector<8x32xf32> to vector<8x32xbf16>
    %cst = arith.constant dense<0.000000e+00> : vector<8x128xf32>
    %12 = tpu.matmul %11, %3, %cst {dimension_numbers = #tpu.dot_dimension_numbers<[1], [0], [0], [1], [0, 0, 1, 1], [], []>} : vector<8x32xbf16>, vector<32x128xbf16>, vector<8x128xf32> -> vector<8x128xf32>
    %13 = arith.addf %10, %12 : vector<8x128xf32>
    %14 = vector.extract_strided_slice %13 {offsets = [0, 0], sizes = [8, 32], strides = [1, 1]} : vector<8x128xf32> to vector<8x32xf32>
    %15 = arith.negf %14 : vector<8x32xf32>
    %16 = math.exp %15 : vector<8x32xf32>
    %cst_15 = arith.constant 1.000000e+00 : f32
    %17 = vector.broadcast %cst_15 : f32 to vector<8x32xf32>
    %18 = arith.addf %17, %16 : vector<8x32xf32>
    %19 = arith.divf %17, %18 : vector<8x32xf32>
    %20 = vector.extract_strided_slice %13 {offsets = [0, 32], sizes = [8, 32], strides = [1, 1]} : vector<8x128xf32> to vector<8x32xf32>
    %21 = arith.negf %20 : vector<8x32xf32>
    %22 = math.exp %21 : vector<8x32xf32>
    %cst_16 = arith.constant 1.000000e+00 : f32
    %23 = vector.broadcast %cst_16 : f32 to vector<8x32xf32>
    %24 = arith.addf %23, %22 : vector<8x32xf32>
    %25 = arith.divf %23, %24 : vector<8x32xf32>
    %26 = vector.extract_strided_slice %13 {offsets = [0, 64], sizes = [8, 32], strides = [1, 1]} : vector<8x128xf32> to vector<8x32xf32>
    %27 = math.tanh %26 : vector<8x32xf32>
    %28 = vector.extract_strided_slice %13 {offsets = [0, 96], sizes = [8, 32], strides = [1, 1]} : vector<8x128xf32> to vector<8x32xf32>
    %29 = arith.negf %28 : vector<8x32xf32>
    %30 = math.exp %29 : vector<8x32xf32>
    %cst_17 = arith.constant 1.000000e+00 : f32
    %31 = vector.broadcast %cst_17 : f32 to vector<8x32xf32>
    %32 = arith.addf %31, %30 : vector<8x32xf32>
    %33 = arith.divf %31, %32 : vector<8x32xf32>
    %34 = arith.mulf %25, %6 : vector<8x32xf32>
    %35 = arith.mulf %19, %27 : vector<8x32xf32>
    %36 = arith.addf %34, %35 : vector<8x32xf32>
    %37 = math.tanh %36 : vector<8x32xf32>
    %38 = arith.mulf %33, %37 : vector<8x32xf32>
    %c0_18 = arith.constant 0 : index
    %c0_19 = arith.constant 0 : index
    %c0_20 = arith.constant 0 : index
    %39 = vector.load %arg5[%c0_18, %c0_19, %c0_20] : memref<4x8x32xf32, #tpu.memory_space<vmem>>, vector<1x8x32xf32>
    %40 = vector.shape_cast %39 : vector<1x8x32xf32> to vector<8x32xf32>
    %41 = vector.shape_cast %38 : vector<8x32xf32> to vector<1x8x32xf32>
    tpu.vector_store %arg5[%c0_18, %c0_19, %c0_20], %41 {strides = array<i32>} : memref<4x8x32xf32, #tpu.memory_space<vmem>>, vector<1x8x32xf32>,
    %c3 = arith.constant 3 : index
    %c0_21 = arith.constant 0 : index
    %c0_22 = arith.constant 0 : index
    %42 = vector.load %arg2[%c3, %c0_21, %c0_22] : memref<4x8x128xf32, #tpu.memory_space<vmem>>, vector<1x8x128xf32>
    %43 = vector.shape_cast %42 : vector<1x8x128xf32> to vector<8x128xf32>
    %44 = arith.truncf %7 : vector<8x32xf32> to vector<8x32xbf16>
    %cst_23 = arith.constant dense<0.000000e+00> : vector<8x128xf32>
    %45 = tpu.matmul %44, %4, %cst_23 {dimension_numbers = #tpu.dot_dimension_numbers<[1], [0], [0], [1], [0, 0, 1, 1], [], []>} : vector<8x32xbf16>, vector<32x128xbf16>, vector<8x128xf32> -> vector<8x128xf32>
    %46 = arith.addf %43, %45 : vector<8x128xf32>
    %47 = vector.extract_strided_slice %46 {offsets = [0, 0], sizes = [8, 32], strides = [1, 1]} : vector<8x128xf32> to vector<8x32xf32>
    %48 = arith.negf %47 : vector<8x32xf32>
    %49 = math.exp %48 : vector<8x32xf32>
    %cst_24 = arith.constant 1.000000e+00 : f32
    %50 = vector.broadcast %cst_24 : f32 to vector<8x32xf32>
    %51 = arith.addf %50, %49 : vector<8x32xf32>
    %52 = arith.divf %50, %51 : vector<8x32xf32>
    %53 = vector.extract_strided_slice %46 {offsets = [0, 32], sizes = [8, 32], strides = [1, 1]} : vector<8x128xf32> to vector<8x32xf32>
    %54 = arith.negf %53 : vector<8x32xf32>
    %55 = math.exp %54 : vector<8x32xf32>
    %cst_25 = arith.constant 1.000000e+00 : f32
    %56 = vector.broadcast %cst_25 : f32 to vector<8x32xf32>
    %57 = arith.addf %56, %55 : vector<8x32xf32>
    %58 = arith.divf %56, %57 : vector<8x32xf32>
    %59 = vector.extract_strided_slice %46 {offsets = [0, 64], sizes = [8, 32], strides = [1, 1]} : vector<8x128xf32> to vector<8x32xf32>
    %60 = math.tanh %59 : vector<8x32xf32>
    %61 = vector.extract_strided_slice %46 {offsets = [0, 96], sizes = [8, 32], strides = [1, 1]} : vector<8x128xf32> to vector<8x32xf32>
    %62 = arith.negf %61 : vector<8x32xf32>
    %63 = math.exp %62 : vector<8x32xf32>
    %cst_26 = arith.constant 1.000000e+00 : f32
    %64 = vector.broadcast %cst_26 : f32 to vector<8x32xf32>
    %65 = arith.addf %64, %63 : vector<8x32xf32>
    %66 = arith.divf %64, %65 : vector<8x32xf32>
    %67 = arith.mulf %58, %8 : vector<8x32xf32>
    %68 = arith.mulf %52, %60 : vector<8x32xf32>
    %69 = arith.addf %67, %68 : vector<8x32xf32>
    %70 = math.tanh %69 : vector<8x32xf32>
    %71 = arith.mulf %66, %70 : vector<8x32xf32>
    %c3_27 = arith.constant 3 : index
    %c0_28 = arith.constant 0 : index
    %c0_29 = arith.constant 0 : index
    %72 = vector.load %arg6[%c3_27, %c0_28, %c0_29] : memref<4x8x32xf32, #tpu.memory_space<vmem>>, vector<1x8x32xf32>
    %73 = vector.shape_cast %72 : vector<1x8x32xf32> to vector<8x32xf32>
    %74 = vector.shape_cast %71 : vector<8x32xf32> to vector<1x8x32xf32>
    tpu.vector_store %arg6[%c3_27, %c0_28, %c0_29], %74 {strides = array<i32>} : memref<4x8x32xf32, #tpu.memory_space<vmem>>, vector<1x8x32xf32>,
    %c1 = arith.constant 1 : index
    %c0_30 = arith.constant 0 : index
    %c0_31 = arith.constant 0 : index
    %75 = vector.load %arg1[%c1, %c0_30, %c0_31] : memref<4x8x128xf32, #tpu.memory_space<vmem>>, vector<1x8x128xf32>
    %76 = vector.shape_cast %75 : vector<1x8x128xf32> to vector<8x128xf32>
    %77 = arith.truncf %38 : vector<8x32xf32> to vector<8x32xbf16>
    %cst_32 = arith.constant dense<0.000000e+00> : vector<8x128xf32>
    %78 = tpu.matmul %77, %3, %cst_32 {dimension_numbers = #tpu.dot_dimension_numbers<[1], [0], [0], [1], [0, 0, 1, 1], [], []>} : vector<8x32xbf16>, vector<32x128xbf16>, vector<8x128xf32> -> vector<8x128xf32>
    %79 = arith.addf %76, %78 : vector<8x128xf32>
    %80 = vector.extract_strided_slice %79 {offsets = [0, 0], sizes = [8, 32], strides = [1, 1]} : vector<8x128xf32> to vector<8x32xf32>
    %81 = arith.negf %80 : vector<8x32xf32>
    %82 = math.exp %81 : vector<8x32xf32>
    %cst_33 = arith.constant 1.000000e+00 : f32
    %83 = vector.broadcast %cst_33 : f32 to vector<8x32xf32>
    %84 = arith.addf %83, %82 : vector<8x32xf32>
    %85 = arith.divf %83, %84 : vector<8x32xf32>
    %86 = vector.extract_strided_slice %79 {offsets = [0, 32], sizes = [8, 32], strides = [1, 1]} : vector<8x128xf32> to vector<8x32xf32>
    %87 = arith.negf %86 : vector<8x32xf32>
    %88 = math.exp %87 : vector<8x32xf32>
    %cst_34 = arith.constant 1.000000e+00 : f32
    %89 = vector.broadcast %cst_34 : f32 to vector<8x32xf32>
    %90 = arith.addf %89, %88 : vector<8x32xf32>
    %91 = arith.divf %89, %90 : vector<8x32xf32>
    %92 = vector.extract_strided_slice %79 {offsets = [0, 64], sizes = [8, 32], strides = [1, 1]} : vector<8x128xf32> to vector<8x32xf32>
    %93 = math.tanh %92 : vector<8x32xf32>
    %94 = vector.extract_strided_slice %79 {offsets = [0, 96], sizes = [8, 32], strides = [1, 1]} : vector<8x128xf32> to vector<8x32xf32>
    %95 = arith.negf %94 : vector<8x32xf32>
    %96 = math.exp %95 : vector<8x32xf32>
    %cst_35 = arith.constant 1.000000e+00 : f32
    %97 = vector.broadcast %cst_35 : f32 to vector<8x32xf32>
    %98 = arith.addf %97, %96 : vector<8x32xf32>
    %99 = arith.divf %97, %98 : vector<8x32xf32>
    %100 = arith.mulf %91, %36 : vector<8x32xf32>
    %101 = arith.mulf %85, %93 : vector<8x32xf32>
    %102 = arith.addf %100, %101 : vector<8x32xf32>
    %103 = math.tanh %102 : vector<8x32xf32>
    %104 = arith.mulf %99, %103 : vector<8x32xf32>
    %c1_36 = arith.constant 1 : index
    %c0_37 = arith.constant 0 : index
    %c0_38 = arith.constant 0 : index
    %105 = vector.load %arg5[%c1_36, %c0_37, %c0_38] : memref<4x8x32xf32, #tpu.memory_space<vmem>>, vector<1x8x32xf32>
    %106 = vector.shape_cast %105 : vector<1x8x32xf32> to vector<8x32xf32>
    %107 = vector.shape_cast %104 : vector<8x32xf32> to vector<1x8x32xf32>
    tpu.vector_store %arg5[%c1_36, %c0_37, %c0_38], %107 {strides = array<i32>} : memref<4x8x32xf32, #tpu.memory_space<vmem>>, vector<1x8x32xf32>,
    %c2 = arith.constant 2 : index
    %c0_39 = arith.constant 0 : index
    %c0_40 = arith.constant 0 : index
    %108 = vector.load %arg2[%c2, %c0_39, %c0_40] : memref<4x8x128xf32, #tpu.memory_space<vmem>>, vector<1x8x128xf32>
    %109 = vector.shape_cast %108 : vector<1x8x128xf32> to vector<8x128xf32>
    %110 = arith.truncf %71 : vector<8x32xf32> to vector<8x32xbf16>
    %cst_41 = arith.constant dense<0.000000e+00> : vector<8x128xf32>
    %111 = tpu.matmul %110, %4, %cst_41 {dimension_numbers = #tpu.dot_dimension_numbers<[1], [0], [0], [1], [0, 0, 1, 1], [], []>} : vector<8x32xbf16>, vector<32x128xbf16>, vector<8x128xf32> -> vector<8x128xf32>
    %112 = arith.addf %109, %111 : vector<8x128xf32>
    %113 = vector.extract_strided_slice %112 {offsets = [0, 0], sizes = [8, 32], strides = [1, 1]} : vector<8x128xf32> to vector<8x32xf32>
    %114 = arith.negf %113 : vector<8x32xf32>
    %115 = math.exp %114 : vector<8x32xf32>
    %cst_42 = arith.constant 1.000000e+00 : f32
    %116 = vector.broadcast %cst_42 : f32 to vector<8x32xf32>
    %117 = arith.addf %116, %115 : vector<8x32xf32>
    %118 = arith.divf %116, %117 : vector<8x32xf32>
    %119 = vector.extract_strided_slice %112 {offsets = [0, 32], sizes = [8, 32], strides = [1, 1]} : vector<8x128xf32> to vector<8x32xf32>
    %120 = arith.negf %119 : vector<8x32xf32>
    %121 = math.exp %120 : vector<8x32xf32>
    %cst_43 = arith.constant 1.000000e+00 : f32
    %122 = vector.broadcast %cst_43 : f32 to vector<8x32xf32>
    %123 = arith.addf %122, %121 : vector<8x32xf32>
    %124 = arith.divf %122, %123 : vector<8x32xf32>
    %125 = vector.extract_strided_slice %112 {offsets = [0, 64], sizes = [8, 32], strides = [1, 1]} : vector<8x128xf32> to vector<8x32xf32>
    %126 = math.tanh %125 : vector<8x32xf32>
    %127 = vector.extract_strided_slice %112 {offsets = [0, 96], sizes = [8, 32], strides = [1, 1]} : vector<8x128xf32> to vector<8x32xf32>
    %128 = arith.negf %127 : vector<8x32xf32>
    %129 = math.exp %128 : vector<8x32xf32>
    %cst_44 = arith.constant 1.000000e+00 : f32
    %130 = vector.broadcast %cst_44 : f32 to vector<8x32xf32>
    %131 = arith.addf %130, %129 : vector<8x32xf32>
    %132 = arith.divf %130, %131 : vector<8x32xf32>
    %133 = arith.mulf %124, %69 : vector<8x32xf32>
    %134 = arith.mulf %118, %126 : vector<8x32xf32>
    %135 = arith.addf %133, %134 : vector<8x32xf32>
    %136 = math.tanh %135 : vector<8x32xf32>
    %137 = arith.mulf %132, %136 : vector<8x32xf32>
    %c2_45 = arith.constant 2 : index
    %c0_46 = arith.constant 0 : index
    %c0_47 = arith.constant 0 : index
    %138 = vector.load %arg6[%c2_45, %c0_46, %c0_47] : memref<4x8x32xf32, #tpu.memory_space<vmem>>, vector<1x8x32xf32>
    %139 = vector.shape_cast %138 : vector<1x8x32xf32> to vector<8x32xf32>
    %140 = vector.shape_cast %137 : vector<8x32xf32> to vector<1x8x32xf32>
    tpu.vector_store %arg6[%c2_45, %c0_46, %c0_47], %140 {strides = array<i32>} : memref<4x8x32xf32, #tpu.memory_space<vmem>>, vector<1x8x32xf32>,
    %c2_48 = arith.constant 2 : index
    %c0_49 = arith.constant 0 : index
    %c0_50 = arith.constant 0 : index
    %141 = vector.load %arg1[%c2_48, %c0_49, %c0_50] : memref<4x8x128xf32, #tpu.memory_space<vmem>>, vector<1x8x128xf32>
    %142 = vector.shape_cast %141 : vector<1x8x128xf32> to vector<8x128xf32>
    %143 = arith.truncf %104 : vector<8x32xf32> to vector<8x32xbf16>
    %cst_51 = arith.constant dense<0.000000e+00> : vector<8x128xf32>
    %144 = tpu.matmul %143, %3, %cst_51 {dimension_numbers = #tpu.dot_dimension_numbers<[1], [0], [0], [1], [0, 0, 1, 1], [], []>} : vector<8x32xbf16>, vector<32x128xbf16>, vector<8x128xf32> -> vector<8x128xf32>
    %145 = arith.addf %142, %144 : vector<8x128xf32>
    %146 = vector.extract_strided_slice %145 {offsets = [0, 0], sizes = [8, 32], strides = [1, 1]} : vector<8x128xf32> to vector<8x32xf32>
    %147 = arith.negf %146 : vector<8x32xf32>
    %148 = math.exp %147 : vector<8x32xf32>
    %cst_52 = arith.constant 1.000000e+00 : f32
    %149 = vector.broadcast %cst_52 : f32 to vector<8x32xf32>
    %150 = arith.addf %149, %148 : vector<8x32xf32>
    %151 = arith.divf %149, %150 : vector<8x32xf32>
    %152 = vector.extract_strided_slice %145 {offsets = [0, 32], sizes = [8, 32], strides = [1, 1]} : vector<8x128xf32> to vector<8x32xf32>
    %153 = arith.negf %152 : vector<8x32xf32>
    %154 = math.exp %153 : vector<8x32xf32>
    %cst_53 = arith.constant 1.000000e+00 : f32
    %155 = vector.broadcast %cst_53 : f32 to vector<8x32xf32>
    %156 = arith.addf %155, %154 : vector<8x32xf32>
    %157 = arith.divf %155, %156 : vector<8x32xf32>
    %158 = vector.extract_strided_slice %145 {offsets = [0, 64], sizes = [8, 32], strides = [1, 1]} : vector<8x128xf32> to vector<8x32xf32>
    %159 = math.tanh %158 : vector<8x32xf32>
    %160 = vector.extract_strided_slice %145 {offsets = [0, 96], sizes = [8, 32], strides = [1, 1]} : vector<8x128xf32> to vector<8x32xf32>
    %161 = arith.negf %160 : vector<8x32xf32>
    %162 = math.exp %161 : vector<8x32xf32>
    %cst_54 = arith.constant 1.000000e+00 : f32
    %163 = vector.broadcast %cst_54 : f32 to vector<8x32xf32>
    %164 = arith.addf %163, %162 : vector<8x32xf32>
    %165 = arith.divf %163, %164 : vector<8x32xf32>
    %166 = arith.mulf %157, %102 : vector<8x32xf32>
    %167 = arith.mulf %151, %159 : vector<8x32xf32>
    %168 = arith.addf %166, %167 : vector<8x32xf32>
    %169 = math.tanh %168 : vector<8x32xf32>
    %170 = arith.mulf %165, %169 : vector<8x32xf32>
    %c2_55 = arith.constant 2 : index
    %c0_56 = arith.constant 0 : index
    %c0_57 = arith.constant 0 : index
    %171 = vector.load %arg5[%c2_55, %c0_56, %c0_57] : memref<4x8x32xf32, #tpu.memory_space<vmem>>, vector<1x8x32xf32>
    %172 = vector.shape_cast %171 : vector<1x8x32xf32> to vector<8x32xf32>
    %173 = vector.shape_cast %170 : vector<8x32xf32> to vector<1x8x32xf32>
    tpu.vector_store %arg5[%c2_55, %c0_56, %c0_57], %173 {strides = array<i32>} : memref<4x8x32xf32, #tpu.memory_space<vmem>>, vector<1x8x32xf32>,
    %c1_58 = arith.constant 1 : index
    %c0_59 = arith.constant 0 : index
    %c0_60 = arith.constant 0 : index
    %174 = vector.load %arg2[%c1_58, %c0_59, %c0_60] : memref<4x8x128xf32, #tpu.memory_space<vmem>>, vector<1x8x128xf32>
    %175 = vector.shape_cast %174 : vector<1x8x128xf32> to vector<8x128xf32>
    %176 = arith.truncf %137 : vector<8x32xf32> to vector<8x32xbf16>
    %cst_61 = arith.constant dense<0.000000e+00> : vector<8x128xf32>
    %177 = tpu.matmul %176, %4, %cst_61 {dimension_numbers = #tpu.dot_dimension_numbers<[1], [0], [0], [1], [0, 0, 1, 1], [], []>} : vector<8x32xbf16>, vector<32x128xbf16>, vector<8x128xf32> -> vector<8x128xf32>
    %178 = arith.addf %175, %177 : vector<8x128xf32>
    %179 = vector.extract_strided_slice %178 {offsets = [0, 0], sizes = [8, 32], strides = [1, 1]} : vector<8x128xf32> to vector<8x32xf32>
    %180 = arith.negf %179 : vector<8x32xf32>
    %181 = math.exp %180 : vector<8x32xf32>
    %cst_62 = arith.constant 1.000000e+00 : f32
    %182 = vector.broadcast %cst_62 : f32 to vector<8x32xf32>
    %183 = arith.addf %182, %181 : vector<8x32xf32>
    %184 = arith.divf %182, %183 : vector<8x32xf32>
    %185 = vector.extract_strided_slice %178 {offsets = [0, 32], sizes = [8, 32], strides = [1, 1]} : vector<8x128xf32> to vector<8x32xf32>
    %186 = arith.negf %185 : vector<8x32xf32>
    %187 = math.exp %186 : vector<8x32xf32>
    %cst_63 = arith.constant 1.000000e+00 : f32
    %188 = vector.broadcast %cst_63 : f32 to vector<8x32xf32>
    %189 = arith.addf %188, %187 : vector<8x32xf32>
    %190 = arith.divf %188, %189 : vector<8x32xf32>
    %191 = vector.extract_strided_slice %178 {offsets = [0, 64], sizes = [8, 32], strides = [1, 1]} : vector<8x128xf32> to vector<8x32xf32>
    %192 = math.tanh %191 : vector<8x32xf32>
    %193 = vector.extract_strided_slice %178 {offsets = [0, 96], sizes = [8, 32], strides = [1, 1]} : vector<8x128xf32> to vector<8x32xf32>
    %194 = arith.negf %193 : vector<8x32xf32>
    %195 = math.exp %194 : vector<8x32xf32>
    %cst_64 = arith.constant 1.000000e+00 : f32
    %196 = vector.broadcast %cst_64 : f32 to vector<8x32xf32>
    %197 = arith.addf %196, %195 : vector<8x32xf32>
    %198 = arith.divf %196, %197 : vector<8x32xf32>
    %199 = arith.mulf %190, %135 : vector<8x32xf32>
    %200 = arith.mulf %184, %192 : vector<8x32xf32>
    %201 = arith.addf %199, %200 : vector<8x32xf32>
    %202 = math.tanh %201 : vector<8x32xf32>
    %203 = arith.mulf %198, %202 : vector<8x32xf32>
    %c1_65 = arith.constant 1 : index
    %c0_66 = arith.constant 0 : index
    %c0_67 = arith.constant 0 : index
    %204 = vector.load %arg6[%c1_65, %c0_66, %c0_67] : memref<4x8x32xf32, #tpu.memory_space<vmem>>, vector<1x8x32xf32>
    %205 = vector.shape_cast %204 : vector<1x8x32xf32> to vector<8x32xf32>
    %206 = vector.shape_cast %203 : vector<8x32xf32> to vector<1x8x32xf32>
    tpu.vector_store %arg6[%c1_65, %c0_66, %c0_67], %206 {strides = array<i32>} : memref<4x8x32xf32, #tpu.memory_space<vmem>>, vector<1x8x32xf32>,
    %c3_68 = arith.constant 3 : index
    %c0_69 = arith.constant 0 : index
    %c0_70 = arith.constant 0 : index
    %207 = vector.load %arg1[%c3_68, %c0_69, %c0_70] : memref<4x8x128xf32, #tpu.memory_space<vmem>>, vector<1x8x128xf32>
    %208 = vector.shape_cast %207 : vector<1x8x128xf32> to vector<8x128xf32>
    %209 = arith.truncf %170 : vector<8x32xf32> to vector<8x32xbf16>
    %cst_71 = arith.constant dense<0.000000e+00> : vector<8x128xf32>
    %210 = tpu.matmul %209, %3, %cst_71 {dimension_numbers = #tpu.dot_dimension_numbers<[1], [0], [0], [1], [0, 0, 1, 1], [], []>} : vector<8x32xbf16>, vector<32x128xbf16>, vector<8x128xf32> -> vector<8x128xf32>
    %211 = arith.addf %208, %210 : vector<8x128xf32>
    %212 = vector.extract_strided_slice %211 {offsets = [0, 0], sizes = [8, 32], strides = [1, 1]} : vector<8x128xf32> to vector<8x32xf32>
    %213 = arith.negf %212 : vector<8x32xf32>
    %214 = math.exp %213 : vector<8x32xf32>
    %cst_72 = arith.constant 1.000000e+00 : f32
    %215 = vector.broadcast %cst_72 : f32 to vector<8x32xf32>
    %216 = arith.addf %215, %214 : vector<8x32xf32>
    %217 = arith.divf %215, %216 : vector<8x32xf32>
    %218 = vector.extract_strided_slice %211 {offsets = [0, 32], sizes = [8, 32], strides = [1, 1]} : vector<8x128xf32> to vector<8x32xf32>
    %219 = arith.negf %218 : vector<8x32xf32>
    %220 = math.exp %219 : vector<8x32xf32>
    %cst_73 = arith.constant 1.000000e+00 : f32
    %221 = vector.broadcast %cst_73 : f32 to vector<8x32xf32>
    %222 = arith.addf %221, %220 : vector<8x32xf32>
    %223 = arith.divf %221, %222 : vector<8x32xf32>
    %224 = vector.extract_strided_slice %211 {offsets = [0, 64], sizes = [8, 32], strides = [1, 1]} : vector<8x128xf32> to vector<8x32xf32>
    %225 = math.tanh %224 : vector<8x32xf32>
    %226 = vector.extract_strided_slice %211 {offsets = [0, 96], sizes = [8, 32], strides = [1, 1]} : vector<8x128xf32> to vector<8x32xf32>
    %227 = arith.negf %226 : vector<8x32xf32>
    %228 = math.exp %227 : vector<8x32xf32>
    %cst_74 = arith.constant 1.000000e+00 : f32
    %229 = vector.broadcast %cst_74 : f32 to vector<8x32xf32>
    %230 = arith.addf %229, %228 : vector<8x32xf32>
    %231 = arith.divf %229, %230 : vector<8x32xf32>
    %232 = arith.mulf %223, %168 : vector<8x32xf32>
    %233 = arith.mulf %217, %225 : vector<8x32xf32>
    %234 = arith.addf %232, %233 : vector<8x32xf32>
    %235 = math.tanh %234 : vector<8x32xf32>
    %236 = arith.mulf %231, %235 : vector<8x32xf32>
    %c3_75 = arith.constant 3 : index
    %c0_76 = arith.constant 0 : index
    %c0_77 = arith.constant 0 : index
    %237 = vector.load %arg5[%c3_75, %c0_76, %c0_77] : memref<4x8x32xf32, #tpu.memory_space<vmem>>, vector<1x8x32xf32>
    %238 = vector.shape_cast %237 : vector<1x8x32xf32> to vector<8x32xf32>
    %239 = vector.shape_cast %236 : vector<8x32xf32> to vector<1x8x32xf32>
    tpu.vector_store %arg5[%c3_75, %c0_76, %c0_77], %239 {strides = array<i32>} : memref<4x8x32xf32, #tpu.memory_space<vmem>>, vector<1x8x32xf32>,
    %c0_78 = arith.constant 0 : index
    %c0_79 = arith.constant 0 : index
    %c0_80 = arith.constant 0 : index
    %240 = vector.load %arg2[%c0_78, %c0_79, %c0_80] : memref<4x8x128xf32, #tpu.memory_space<vmem>>, vector<1x8x128xf32>
    %241 = vector.shape_cast %240 : vector<1x8x128xf32> to vector<8x128xf32>
    %242 = arith.truncf %203 : vector<8x32xf32> to vector<8x32xbf16>
    %cst_81 = arith.constant dense<0.000000e+00> : vector<8x128xf32>
    %243 = tpu.matmul %242, %4, %cst_81 {dimension_numbers = #tpu.dot_dimension_numbers<[1], [0], [0], [1], [0, 0, 1, 1], [], []>} : vector<8x32xbf16>, vector<32x128xbf16>, vector<8x128xf32> -> vector<8x128xf32>
    %244 = arith.addf %241, %243 : vector<8x128xf32>
    %245 = vector.extract_strided_slice %244 {offsets = [0, 0], sizes = [8, 32], strides = [1, 1]} : vector<8x128xf32> to vector<8x32xf32>
    %246 = arith.negf %245 : vector<8x32xf32>
    %247 = math.exp %246 : vector<8x32xf32>
    %cst_82 = arith.constant 1.000000e+00 : f32
    %248 = vector.broadcast %cst_82 : f32 to vector<8x32xf32>
    %249 = arith.addf %248, %247 : vector<8x32xf32>
    %250 = arith.divf %248, %249 : vector<8x32xf32>
    %251 = vector.extract_strided_slice %244 {offsets = [0, 32], sizes = [8, 32], strides = [1, 1]} : vector<8x128xf32> to vector<8x32xf32>
    %252 = arith.negf %251 : vector<8x32xf32>
    %253 = math.exp %252 : vector<8x32xf32>
    %cst_83 = arith.constant 1.000000e+00 : f32
    %254 = vector.broadcast %cst_83 : f32 to vector<8x32xf32>
    %255 = arith.addf %254, %253 : vector<8x32xf32>
    %256 = arith.divf %254, %255 : vector<8x32xf32>
    %257 = vector.extract_strided_slice %244 {offsets = [0, 64], sizes = [8, 32], strides = [1, 1]} : vector<8x128xf32> to vector<8x32xf32>
    %258 = math.tanh %257 : vector<8x32xf32>
    %259 = vector.extract_strided_slice %244 {offsets = [0, 96], sizes = [8, 32], strides = [1, 1]} : vector<8x128xf32> to vector<8x32xf32>
    %260 = arith.negf %259 : vector<8x32xf32>
    %261 = math.exp %260 : vector<8x32xf32>
    %cst_84 = arith.constant 1.000000e+00 : f32
    %262 = vector.broadcast %cst_84 : f32 to vector<8x32xf32>
    %263 = arith.addf %262, %261 : vector<8x32xf32>
    %264 = arith.divf %262, %263 : vector<8x32xf32>
    %265 = arith.mulf %256, %201 : vector<8x32xf32>
    %266 = arith.mulf %250, %258 : vector<8x32xf32>
    %267 = arith.addf %265, %266 : vector<8x32xf32>
    %268 = math.tanh %267 : vector<8x32xf32>
    %269 = arith.mulf %264, %268 : vector<8x32xf32>
    %c0_85 = arith.constant 0 : index
    %c0_86 = arith.constant 0 : index
    %c0_87 = arith.constant 0 : index
    %270 = vector.load %arg6[%c0_85, %c0_86, %c0_87] : memref<4x8x32xf32, #tpu.memory_space<vmem>>, vector<1x8x32xf32>
    %271 = vector.shape_cast %270 : vector<1x8x32xf32> to vector<8x32xf32>
    %272 = vector.shape_cast %269 : vector<8x32xf32> to vector<1x8x32xf32>
    tpu.vector_store %arg6[%c0_85, %c0_86, %c0_87], %272 {strides = array<i32>} : memref<4x8x32xf32, #tpu.memory_space<vmem>>, vector<1x8x32xf32>,
    %c0_88 = arith.constant 0 : index
    %c0_89 = arith.constant 0 : index
    %273 = vector.load %arg7[%c0_88, %c0_89] : memref<8x32xf32, #tpu.memory_space<vmem>>, vector<8x32xf32>
    tpu.vector_store %arg7[%c0_88, %c0_89], %236 {strides = array<i32>} : memref<8x32xf32, #tpu.memory_space<vmem>>, vector<8x32xf32>,
    %c0_90 = arith.constant 0 : index
    %c0_91 = arith.constant 0 : index
    %274 = vector.load %arg8[%c0_90, %c0_91] : memref<8x32xf32, #tpu.memory_space<vmem>>, vector<8x32xf32>
    tpu.vector_store %arg8[%c0_90, %c0_91], %234 {strides = array<i32>} : memref<8x32xf32, #tpu.memory_space<vmem>>, vector<8x32xf32>,
    %c0_92 = arith.constant 0 : index
    %c0_93 = arith.constant 0 : index
    %275 = vector.load %arg9[%c0_92, %c0_93] : memref<8x32xf32, #tpu.memory_space<vmem>>, vector<8x32xf32>
    tpu.vector_store %arg9[%c0_92, %c0_93], %269 {strides = array<i32>} : memref<8x32xf32, #tpu.memory_space<vmem>>, vector<8x32xf32>,
    %c0_94 = arith.constant 0 : index
    %c0_95 = arith.constant 0 : index
    %276 = vector.load %arg10[%c0_94, %c0_95] : memref<8x32xf32, #tpu.memory_space<vmem>>, vector<8x32xf32>
    tpu.vector_store %arg10[%c0_94, %c0_95], %267 {strides = array<i32>} : memref<8x32xf32, #tpu.memory_space<vmem>>, vector<8x32xf32>,
    return
  }
  func.func @transform_0(%arg0: i32) -> (i32, i32, i32) {
    %c0_i32 = arith.constant 0 : i32
    %c0_i32_0 = arith.constant 0 : i32
    %c0_i32_1 = arith.constant 0 : i32
    return %arg0, %c0_i32, %c0_i32_0 : i32, i32, i32
  }
  func.func @transform_1(%arg0: i32) -> (i32, i32, i32) {
    %c1_i32 = arith.constant 1 : i32
    %0 = arith.subi %c1_i32, %arg0 : i32
    %c0_i32 = arith.constant 0 : i32
    %c0_i32_0 = arith.constant 0 : i32
    %c0_i32_1 = arith.constant 0 : i32
    return %0, %c0_i32, %c0_i32_0 : i32, i32, i32
  }
  func.func @transform_2(%arg0: i32) -> (i32, i32) {
    %c0_i32 = arith.constant 0 : i32
    %c0_i32_0 = arith.constant 0 : i32
    %c0_i32_1 = arith.constant 0 : i32
    return %c0_i32, %c0_i32_0 : i32, i32
  }
  func.func @transform_3(%arg0: i32) -> (i32, i32) {
    %c0_i32 = arith.constant 0 : i32
    %c0_i32_0 = arith.constant 0 : i32
    %c0_i32_1 = arith.constant 0 : i32
    return %c0_i32, %c0_i32_0 : i32, i32
  }
  func.func @transform_4(%arg0: i32) -> (i32, i32, i32) {
    %c0_i32 = arith.constant 0 : i32
    %c0_i32_0 = arith.constant 0 : i32
    %c0_i32_1 = arith.constant 0 : i32
    return %arg0, %c0_i32, %c0_i32_0 : i32, i32, i32
  }
  func.func @transform_5(%arg0: i32) -> (i32, i32, i32) {
    %c1_i32 = arith.constant 1 : i32
    %0 = arith.subi %c1_i32, %arg0 : i32
    %c0_i32 = arith.constant 0 : i32
    %c0_i32_0 = arith.constant 0 : i32
    %c0_i32_1 = arith.constant 0 : i32
    return %0, %c0_i32, %c0_i32_0 : i32, i32, i32
  }
}

module attributes {stable_mosaic.version = 11 : i64} {
  func.func @head_kernel(%arg0: i32, %arg1: memref<4x8x32xf32, #tpu.memory_space<vmem>>, %arg2: memref<4x8x32xf32, #tpu.memory_space<vmem>>, %arg3: memref<4x8x32xf32, #tpu.memory_space<vmem>>, %arg4: memref<32x4xf32, #tpu.memory_space<vmem>>, %arg5: memref<32x4xf32, #tpu.memory_space<vmem>>, %arg6: memref<32x4xf32, #tpu.memory_space<vmem>>, %arg7: memref<1x4xf32, #tpu.memory_space<vmem>>, %arg8: memref<8x4xf32, #tpu.memory_space<vmem>>, %arg9: memref<8x32xf32, #tpu.memory_space<vmem>>, %arg10: memref<8x32xf32, #tpu.memory_space<vmem>>, %arg11: memref<8x32xf32, #tpu.memory_space<vmem>>) attributes {dimension_semantics = [#tpu.dimension_semantics<arbitrary>], iteration_bounds = array<i64: 2>, scalar_prefetch = 0 : i64, scratch_operands = 3 : i64, tpu.core_type = #tpu.core_type<tc>, window_params = [{transform_indices = @transform_0, window_bounds = array<i64: 4, 8, 32>}, {transform_indices = @transform_1, window_bounds = array<i64: 4, 8, 32>}, {transform_indices = @transform_2, window_bounds = array<i64: 4, 8, 32>}, {pipeline_mode = #tpu.pipeline_mode<synchronous>, transform_indices = @transform_3, window_bounds = array<i64: 32, 4>}, {pipeline_mode = #tpu.pipeline_mode<synchronous>, transform_indices = @transform_4, window_bounds = array<i64: 32, 4>}, {pipeline_mode = #tpu.pipeline_mode<synchronous>, transform_indices = @transform_5, window_bounds = array<i64: 32, 4>}, {pipeline_mode = #tpu.pipeline_mode<synchronous>, transform_indices = @transform_6, window_bounds = array<i64: 1, 4>}, {pipeline_mode = #tpu.pipeline_mode<synchronous>, transform_indices = @transform_7, window_bounds = array<i64: 8, 4>}]} {
    %c0_i32 = arith.constant 0 : i32
    %0 = arith.cmpi eq, %arg0, %c0_i32 : i32
    %1 = arith.extui %0 : i1 to i32
    %c0_i32_0 = arith.constant 0 : i32
    %2 = arith.cmpi ne, %1, %c0_i32_0 : i32
    scf.if %2 {
      %cst_24 = arith.constant 0xFF800000 : f32
      %21 = vector.broadcast %cst_24 : f32 to vector<8x32xf32>
      %c0_25 = arith.constant 0 : index
      %c0_26 = arith.constant 0 : index
      %22 = vector.load %arg9[%c0_25, %c0_26] : memref<8x32xf32, #tpu.memory_space<vmem>>, vector<8x32xf32>
      tpu.vector_store %arg9[%c0_25, %c0_26], %21 {strides = array<i32>} : memref<8x32xf32, #tpu.memory_space<vmem>>, vector<8x32xf32>,
      %cst_27 = arith.constant 0xFF800000 : f32
      %23 = vector.broadcast %cst_27 : f32 to vector<8x32xf32>
      %c0_28 = arith.constant 0 : index
      %c0_29 = arith.constant 0 : index
      %24 = vector.load %arg10[%c0_28, %c0_29] : memref<8x32xf32, #tpu.memory_space<vmem>>, vector<8x32xf32>
      tpu.vector_store %arg10[%c0_28, %c0_29], %23 {strides = array<i32>} : memref<8x32xf32, #tpu.memory_space<vmem>>, vector<8x32xf32>,
      %cst_30 = arith.constant 0xFF800000 : f32
      %25 = vector.broadcast %cst_30 : f32 to vector<8x32xf32>
      %c0_31 = arith.constant 0 : index
      %c0_32 = arith.constant 0 : index
      %26 = vector.load %arg11[%c0_31, %c0_32] : memref<8x32xf32, #tpu.memory_space<vmem>>, vector<8x32xf32>
      tpu.vector_store %arg11[%c0_31, %c0_32], %25 {strides = array<i32>} : memref<8x32xf32, #tpu.memory_space<vmem>>, vector<8x32xf32>,
    } else {
    }
    %c0 = arith.constant 0 : index
    %c0_1 = arith.constant 0 : index
    %3 = vector.load %arg9[%c0, %c0_1] : memref<8x32xf32, #tpu.memory_space<vmem>>, vector<8x32xf32>
    %c0_2 = arith.constant 0 : index
    %c0_3 = arith.constant 0 : index
    %c0_4 = arith.constant 0 : index
    %4 = vector.load %arg1[%c0_2, %c0_3, %c0_4] : memref<4x8x32xf32, #tpu.memory_space<vmem>>, vector<4x8x32xf32>
    %cst = arith.constant dense<0xFF800000> : vector<8x32xf32>
    %5 = vector.multi_reduction <maximumf>, %4, %cst [0] : vector<4x8x32xf32> to vector<8x32xf32>
    %6 = arith.maximumf %3, %5 : vector<8x32xf32>
    %c0_5 = arith.constant 0 : index
    %c0_6 = arith.constant 0 : index
    %7 = vector.load %arg9[%c0_5, %c0_6] : memref<8x32xf32, #tpu.memory_space<vmem>>, vector<8x32xf32>
    tpu.vector_store %arg9[%c0_5, %c0_6], %6 {strides = array<i32>} : memref<8x32xf32, #tpu.memory_space<vmem>>, vector<8x32xf32>,
    %c0_7 = arith.constant 0 : index
    %c0_8 = arith.constant 0 : index
    %8 = vector.load %arg10[%c0_7, %c0_8] : memref<8x32xf32, #tpu.memory_space<vmem>>, vector<8x32xf32>
    %c0_9 = arith.constant 0 : index
    %c0_10 = arith.constant 0 : index
    %c0_11 = arith.constant 0 : index
    %9 = vector.load %arg2[%c0_9, %c0_10, %c0_11] : memref<4x8x32xf32, #tpu.memory_space<vmem>>, vector<4x8x32xf32>
    %cst_12 = arith.constant dense<0xFF800000> : vector<8x32xf32>
    %10 = vector.multi_reduction <maximumf>, %9, %cst_12 [0] : vector<4x8x32xf32> to vector<8x32xf32>
    %11 = arith.maximumf %8, %10 : vector<8x32xf32>
    %c0_13 = arith.constant 0 : index
    %c0_14 = arith.constant 0 : index
    %12 = vector.load %arg10[%c0_13, %c0_14] : memref<8x32xf32, #tpu.memory_space<vmem>>, vector<8x32xf32>
    tpu.vector_store %arg10[%c0_13, %c0_14], %11 {strides = array<i32>} : memref<8x32xf32, #tpu.memory_space<vmem>>, vector<8x32xf32>,
    %c0_15 = arith.constant 0 : index
    %c0_16 = arith.constant 0 : index
    %13 = vector.load %arg11[%c0_15, %c0_16] : memref<8x32xf32, #tpu.memory_space<vmem>>, vector<8x32xf32>
    %c0_17 = arith.constant 0 : index
    %c0_18 = arith.constant 0 : index
    %c0_19 = arith.constant 0 : index
    %14 = vector.load %arg3[%c0_17, %c0_18, %c0_19] : memref<4x8x32xf32, #tpu.memory_space<vmem>>, vector<4x8x32xf32>
    %cst_20 = arith.constant dense<0xFF800000> : vector<8x32xf32>
    %15 = vector.multi_reduction <maximumf>, %14, %cst_20 [0] : vector<4x8x32xf32> to vector<8x32xf32>
    %16 = arith.maximumf %13, %15 : vector<8x32xf32>
    %c0_21 = arith.constant 0 : index
    %c0_22 = arith.constant 0 : index
    %17 = vector.load %arg11[%c0_21, %c0_22] : memref<8x32xf32, #tpu.memory_space<vmem>>, vector<8x32xf32>
    tpu.vector_store %arg11[%c0_21, %c0_22], %16 {strides = array<i32>} : memref<8x32xf32, #tpu.memory_space<vmem>>, vector<8x32xf32>,
    %c1_i32 = arith.constant 1 : i32
    %18 = arith.cmpi eq, %arg0, %c1_i32 : i32
    %19 = arith.extui %18 : i1 to i32
    %c0_i32_23 = arith.constant 0 : i32
    %20 = arith.cmpi ne, %19, %c0_i32_23 : i32
    scf.if %20 {
      %c0_24 = arith.constant 0 : index
      %c0_25 = arith.constant 0 : index
      %21 = vector.load %arg9[%c0_24, %c0_25] : memref<8x32xf32, #tpu.memory_space<vmem>>, vector<8x32xf32>
      %cst_26 = arith.constant 0.000000e+00 : f32
      %22 = vector.broadcast %cst_26 : f32 to vector<8x32xf32>
      %23 = arith.maximumf %21, %22 : vector<8x32xf32>
      %c0_27 = arith.constant 0 : index
      %c0_28 = arith.constant 0 : index
      %24 = vector.load %arg10[%c0_27, %c0_28] : memref<8x32xf32, #tpu.memory_space<vmem>>, vector<8x32xf32>
      %cst_29 = arith.constant 0.000000e+00 : f32
      %25 = vector.broadcast %cst_29 : f32 to vector<8x32xf32>
      %26 = arith.maximumf %24, %25 : vector<8x32xf32>
      %c0_30 = arith.constant 0 : index
      %c0_31 = arith.constant 0 : index
      %27 = vector.load %arg11[%c0_30, %c0_31] : memref<8x32xf32, #tpu.memory_space<vmem>>, vector<8x32xf32>
      %cst_32 = arith.constant 0.000000e+00 : f32
      %28 = vector.broadcast %cst_32 : f32 to vector<8x32xf32>
      %29 = arith.maximumf %27, %28 : vector<8x32xf32>
      %c0_33 = arith.constant 0 : index
      %c0_34 = arith.constant 0 : index
      %30 = vector.load %arg4[%c0_33, %c0_34] : memref<32x4xf32, #tpu.memory_space<vmem>>, vector<32x4xf32>
      %cst_35 = arith.constant dense<0.000000e+00> : vector<8x4xf32>
      %31 = tpu.matmul %23, %30, %cst_35 {dimension_numbers = #tpu.dot_dimension_numbers<[1], [0], [0], [1], [0, 0, 1, 1], [], []>} : vector<8x32xf32>, vector<32x4xf32>, vector<8x4xf32> -> vector<8x4xf32>
      %c0_36 = arith.constant 0 : index
      %c0_37 = arith.constant 0 : index
      %32 = vector.load %arg5[%c0_36, %c0_37] : memref<32x4xf32, #tpu.memory_space<vmem>>, vector<32x4xf32>
      %cst_38 = arith.constant dense<0.000000e+00> : vector<8x4xf32>
      %33 = tpu.matmul %26, %32, %cst_38 {dimension_numbers = #tpu.dot_dimension_numbers<[1], [0], [0], [1], [0, 0, 1, 1], [], []>} : vector<8x32xf32>, vector<32x4xf32>, vector<8x4xf32> -> vector<8x4xf32>
      %34 = arith.addf %31, %33 : vector<8x4xf32>
      %c0_39 = arith.constant 0 : index
      %c0_40 = arith.constant 0 : index
      %35 = vector.load %arg6[%c0_39, %c0_40] : memref<32x4xf32, #tpu.memory_space<vmem>>, vector<32x4xf32>
      %cst_41 = arith.constant dense<0.000000e+00> : vector<8x4xf32>
      %36 = tpu.matmul %29, %35, %cst_41 {dimension_numbers = #tpu.dot_dimension_numbers<[1], [0], [0], [1], [0, 0, 1, 1], [], []>} : vector<8x32xf32>, vector<32x4xf32>, vector<8x4xf32> -> vector<8x4xf32>
      %37 = arith.addf %34, %36 : vector<8x4xf32>
      %c0_42 = arith.constant 0 : index
      %c0_43 = arith.constant 0 : index
      %38 = vector.load %arg7[%c0_42, %c0_43] : memref<1x4xf32, #tpu.memory_space<vmem>>, vector<1x4xf32>
      %39 = vector.broadcast %38 : vector<1x4xf32> to vector<8x4xf32>
      %40 = arith.addf %37, %39 : vector<8x4xf32>
      %c0_44 = arith.constant 0 : index
      %c0_45 = arith.constant 0 : index
      %41 = vector.load %arg8[%c0_44, %c0_45] : memref<8x4xf32, #tpu.memory_space<vmem>>, vector<8x4xf32>
      tpu.vector_store %arg8[%c0_44, %c0_45], %40 {strides = array<i32>} : memref<8x4xf32, #tpu.memory_space<vmem>>, vector<8x4xf32>,
    } else {
    }
    return
  }
  func.func @transform_0(%arg0: i32) -> (i32, i32, i32) {
    %c0_i32 = arith.constant 0 : i32
    %c0_i32_0 = arith.constant 0 : i32
    %c0_i32_1 = arith.constant 0 : i32
    return %arg0, %c0_i32, %c0_i32_0 : i32, i32, i32
  }
  func.func @transform_1(%arg0: i32) -> (i32, i32, i32) {
    %c0_i32 = arith.constant 0 : i32
    %c0_i32_0 = arith.constant 0 : i32
    %c0_i32_1 = arith.constant 0 : i32
    return %arg0, %c0_i32, %c0_i32_0 : i32, i32, i32
  }
  func.func @transform_2(%arg0: i32) -> (i32, i32, i32) {
    %c0_i32 = arith.constant 0 : i32
    %c0_i32_0 = arith.constant 0 : i32
    %c0_i32_1 = arith.constant 0 : i32
    return %arg0, %c0_i32, %c0_i32_0 : i32, i32, i32
  }
  func.func @transform_3(%arg0: i32) -> (i32, i32) {
    %c0_i32 = arith.constant 0 : i32
    %c0_i32_0 = arith.constant 0 : i32
    %c0_i32_1 = arith.constant 0 : i32
    return %c0_i32, %c0_i32_0 : i32, i32
  }
  func.func @transform_4(%arg0: i32) -> (i32, i32) {
    %c0_i32 = arith.constant 0 : i32
    %c0_i32_0 = arith.constant 0 : i32
    %c0_i32_1 = arith.constant 0 : i32
    return %c0_i32, %c0_i32_0 : i32, i32
  }
  func.func @transform_5(%arg0: i32) -> (i32, i32) {
    %c0_i32 = arith.constant 0 : i32
    %c0_i32_0 = arith.constant 0 : i32
    %c0_i32_1 = arith.constant 0 : i32
    return %c0_i32, %c0_i32_0 : i32, i32
  }
  func.func @transform_6(%arg0: i32) -> (i32, i32) {
    %c0_i32 = arith.constant 0 : i32
    %c0_i32_0 = arith.constant 0 : i32
    %c0_i32_1 = arith.constant 0 : i32
    return %c0_i32, %c0_i32_0 : i32, i32
  }
  func.func @transform_7(%arg0: i32) -> (i32, i32) {
    %c0_i32 = arith.constant 0 : i32
    %c0_i32_0 = arith.constant 0 : i32
    %c0_i32_1 = arith.constant 0 : i32
    return %c0_i32, %c0_i32_0 : i32, i32
  }
}

</mosaic_0001>

<bundles_post_ra>
// kernel: rcnn_forward.10
= control target key start
LH: loop header
LB: loop body
LE: loop exit
PB: predicated region body
PF: predicated region fallthrough
CT: control target
= control target key end

     0   :  { %vm50_vm0 = vcmask 261120   ;;  %s445_s2 = inlined_call_operand.vmem [shape: bf16[32,128], index: 2, kind: input, shape index: {}]   ;;  %s446_s3 = inlined_call_operand.vmem [shape: bf16[32,128], index: 3, kind: input, shape index: {}]   ;;  %s447_s0 = inlined_call_operand.vmem [shape: f32[64,32], index: 0, kind: input, shape index: {}]   ;;  %s448_s1 = inlined_call_operand.vmem [shape: f32[64,32], index: 1, kind: input, shape index: {}]   ;;  %s449_s4 = inlined_call_operand.vmem [shape: f32[1,128], index: 4, kind: input, shape index: {}]   ;;  %s450_s5 = inlined_call_operand.vmem [shape: f32[64,128], index: 5, kind: output, shape index: {}]  }
   0x1   :  { %v316_v0 = vld [vmem:[%s445_s2 + $0x8] sm:$0xff]   ;;  %v318_v2 = vld [vmem:[%s445_s2] sm:$0xff]   ;;  %v24_v9 = vld [vmem:[%s447_s0 + $0x10] sm:$0xff] }
   0x2   :  { %v317_v1 = vld [vmem:[%s446_s3 + $0x8] sm:$0xff]   ;;  %292 = vmatprep.subr.bf16.mxu0 %v316_v0  ;;  %v319_v3 = vld [vmem:[%s446_s3] sm:$0xff]   ;;  %v25_v10 = vld [vmem:[%s447_s0 + $0x18] sm:$0xff] }
   0x3   :  { %304 = vmatprep.subr.bf16.mxu1 %v317_v1  ;;  %293 = vmatpush3.bf16.msra.mxu0 %v316_v0  ;;  %v22_v4 = vld [vmem:[%s447_s0] sm:$0xff]  ;;  %v23_v5 = vld [vmem:[%s447_s0 + $0x8] sm:$0xff]  ;;  %v31_v12 = vpack.c.bf16 %v25_v10, %v24_v9  ;;  %v144_v13 = vld [vmem:[%s448_s1 + $0x10] sm:$0xff] }
   0x4   :  { %305 = vmatpush3.bf16.msra.mxu1 %v317_v1  ;;  %294 = vmatprep.subr.bf16.mxu0 %v318_v2  ;;  %v142_v6 = vld [vmem:[%s448_s1] sm:$0xff]  ;;  %v30_v7 = vpack.c.bf16 %v23_v5, %v22_v4  ;;  %v143_v8 = vld [vmem:[%s448_s1 + $0x8] sm:$0xff]  ;;  %v145_v14 = vld [vmem:[%s448_s1 + $0x18] sm:$0xff] }
   0x5   :  { %306 = vmatprep.subr.bf16.mxu1 %v319_v3  ;;  %v150_v11 = vpack.c.bf16 %v143_v8, %v142_v6  ;;  %v26_v15 = vld [vmem:[%s447_s0 + $0x20] sm:$0xff]  ;;  %v151_v16 = vpack.c.bf16 %v145_v14, %v144_v13  ;;  %v27_v17 = vld [vmem:[%s447_s0 + $0x28] sm:$0xff]  ;;  %v28_v22 = vld [vmem:[%s447_s0 + $0x30] sm:$0xff] }
   0x6   :  { %296 = vmatprep.mubr.msk.bf16.mxu0 %vm50_vm0, %v30_v7  ;;  %v146_v18 = vld [vmem:[%s448_s1 + $0x20] sm:$0xff]  ;;  %v147_v19 = vld [vmem:[%s448_s1 + $0x28] sm:$0xff]  ;;  %v32_v20 = vpack.c.bf16 %v27_v17, %v26_v15  ;;  %v29_v23 = vld [vmem:[%s447_s0 + $0x38] sm:$0xff] }
   0x7   :  { %295 = vmatpush3.bf16.msra.mxu0 %v318_v2  ;;  %308 = vmatprep.mubr.msk.bf16.mxu1 %vm50_vm0, %v150_v11  ;;  %v152_v21 = vpack.c.bf16 %v147_v19, %v146_v18  ;;  %v148_v24 = vld [vmem:[%s448_s1 + $0x30] sm:$0xff]  ;;  %v149_v25 = vld [vmem:[%s448_s1 + $0x38] sm:$0xff]  ;;  %v33_v26 = vpack.c.bf16 %v29_v23, %v28_v22  ;;  %v273_v28 = vld [vmem:[%s449_s4] ss:$0 sm:$0xff] }
   0x8   :  { %307 = vmatpush3.bf16.msra.mxu1 %v319_v3  ;;  %v153_v27 = vpack.c.bf16 %v149_v25, %v148_v24 }
   0xa   :  { %297 = vmatmul.mubr.msk.bf16.vlgmr.msra.gmra.mxu0 %vm50_vm0, %v31_v12 }
   0xb   :  { %309 = vmatmul.mubr.msk.bf16.vlgmr.msra.gmra.mxu1 %vm50_vm0, %v151_v16  ;;  %300 = vmatprep.mubr.msk.bf16.mxu0 %vm50_vm0, %v32_v20 }
   0xc   :  { %312 = vmatprep.mubr.msk.bf16.mxu1 %vm50_vm0, %v152_v21 }
  0x12   :  { %301 = vmatmul.mubr.msk.bf16.gmra.mxu0 %vm50_vm0, %v33_v26 }
  0x13   :  { %313 = vmatmul.mubr.msk.bf16.gmra.mxu1 %vm50_vm0, %v153_v27 }
  0xca   :  { %v298_v29 = vpop.f32.mrf.mxu0 }
  0xcb   :  { %v136_v30 = vadd.f32 %v298_v29, %v273_v28  ;;  %v310_v31 = vpop.f32.mrf.mxu1 }
  0xcc   :  { %v97_v32 = vpop.f32.mrf.mxu0 }
  0xcd   :  { %v249_v33 = vadd.f32 %v310_v31, %v136_v30  ;;  %v134_v34 = vadd.f32 %v273_v28, %v97_v32  ;;  %v216_v35 = vpop.f32.mrf.mxu1 }
  0xce   :  { %v299_v36 = vpop.f32.mrf.mxu0 }
  0xcf   :  { %257 = vst [vmem:[%s450_s5 + $0x10] sm:$0xff] %v249_v33  ;;  %v247_v37 = vadd.f32 %v216_v35, %v134_v34  ;;  %v137_v38 = vadd.f32 %v299_v36, %v273_v28  ;;  %v311_v39 = vpop.f32.mrf.mxu1 }
  0xd0   :  { %v100_v40 = vpop.f32.mrf.mxu0 }
  0xd1   :  { %255 = vst [vmem:[%s450_s5] sm:$0xff] %v247_v37  ;;  %v250_v41 = vadd.f32 %v311_v39, %v137_v38  ;;  %v135_v42 = vadd.f32 %v273_v28, %v100_v40  ;;  %v219_v43 = vpop.f32.mrf.mxu1 }
  0xd2   :  { %v302_v44 = vpop.f32.mrf.mxu0 }
  0xd3   :  { %258 = vst [vmem:[%s450_s5 + $0x18] sm:$0xff] %v250_v41  ;;  %v248_v45 = vadd.f32 %v219_v43, %v135_v42  ;;  %v140_v46 = vadd.f32 %v302_v44, %v273_v28  ;;  %v314_v47 = vpop.f32.mrf.mxu1 }
  0xd4   :  { %v113_v48 = vpop.f32.mrf.mxu0 }
  0xd5   :  { %256 = vst [vmem:[%s450_s5 + $0x8] sm:$0xff] %v248_v45  ;;  %v253_v49 = vadd.f32 %v314_v47, %v140_v46  ;;  %v138_v50 = vadd.f32 %v273_v28, %v113_v48  ;;  %v232_v51 = vpop.f32.mrf.mxu1 }
  0xd6   :  { %v303_v52 = vpop.f32.mrf.mxu0 }
  0xd7   :  { %261 = vst [vmem:[%s450_s5 + $0x30] sm:$0xff] %v253_v49  ;;  %v251_v53 = vadd.f32 %v232_v51, %v138_v50  ;;  %v141_v54 = vadd.f32 %v303_v52, %v273_v28  ;;  %v315_v55 = vpop.f32.mrf.mxu1 }
  0xd8   :  { %v116_v56 = vpop.f32.mrf.mxu0 }
  0xd9   :  { %259 = vst [vmem:[%s450_s5 + $0x20] sm:$0xff] %v251_v53  ;;  %v254_v57 = vadd.f32 %v315_v55, %v141_v54  ;;  %v139_v58 = vadd.f32 %v273_v28, %v116_v56  ;;  %v235_v59 = vpop.f32.mrf.mxu1 }
  0xdb   :  { %262 = vst [vmem:[%s450_s5 + $0x38] sm:$0xff] %v254_v57  ;;  %v252_v60 = vadd.f32 %v235_v59, %v139_v58 }
  0xdd   :  { %260 = vst [vmem:[%s450_s5 + $0x28] sm:$0xff] %v252_v60 }

// kernel: rcnn_forward.7
= control target key start
LH: loop header
LB: loop body
LE: loop exit
PB: predicated region body
PF: predicated region fallthrough
CT: control target
= control target key end

     0   :  { %vm44_vm0 = vcmask 261120   ;;  %s260_s1 = inlined_call_operand.vmem [shape: bf16[32,128], index: 1, kind: input, shape index: {}]   ;;  %s261_s0 = inlined_call_operand.vmem [shape: f32[64,32], index: 0, kind: input, shape index: {}]   ;;  %s262_s2 = inlined_call_operand.vmem [shape: f32[1,128], index: 2, kind: input, shape index: {}]   ;;  %s263_s3 = inlined_call_operand.vmem [shape: f32[64,128], index: 3, kind: output, shape index: {}]  }
   0x1   :  { %v177_v0 = vld [vmem:[%s260_s1 + $0x8] sm:$0xff]   ;;  %v178_v1 = vld [vmem:[%s260_s1] sm:$0xff]   ;;  %v18_v7 = vld [vmem:[%s261_s0 + $0x10] sm:$0xff] }
   0x2   :  { %161 = vmatprep.subr.bf16.mxu0 %v177_v0  ;;  %173 = vmatprep.subr.bf16.mxu1 %v177_v0  ;;  %v16_v2 = vld [vmem:[%s261_s0] sm:$0xff]  ;;  %v17_v3 = vld [vmem:[%s261_s0 + $0x8] sm:$0xff]  ;;  %v19_v8 = vld [vmem:[%s261_s0 + $0x18] sm:$0xff] }
   0x3   :  { %v20_v4 = vld [vmem:[%s261_s0 + $0x20] sm:$0xff]  ;;  %162 = vmatpush3.bf16.msra.mxu0 %v177_v0  ;;  %175 = vmatpush3.bf16.msra.mxu1 %v177_v0  ;;  %v24_v5 = vpack.c.bf16 %v17_v3, %v16_v2  ;;  %v21_v6 = vld [vmem:[%s261_s0 + $0x28] sm:$0xff]  ;;  %v22_v10 = vld [vmem:[%s261_s0 + $0x30] sm:$0xff]  ;;  %v25_v12 = vpack.c.bf16 %v19_v8, %v18_v7 }
   0x4   :  { %163 = vmatprep.subr.bf16.mxu0 %v178_v1  ;;  %174 = vmatprep.subr.bf16.mxu1 %v178_v1  ;;  %v26_v9 = vpack.c.bf16 %v21_v6, %v20_v4  ;;  %v23_v11 = vld [vmem:[%s261_s0 + $0x38] sm:$0xff]  ;;  %v154_v14 = vld [vmem:[%s262_s2] ss:$0 sm:$0xff] }
   0x5   :  { %165 = vmatprep.mubr.msk.bf16.mxu0 %vm44_vm0, %v24_v5  ;;  %v27_v13 = vpack.c.bf16 %v23_v11, %v22_v10 }
   0x6   :  { %169 = vmatprep.mubr.msk.bf16.mxu1 %vm44_vm0, %v26_v9 }
   0x7   :  { %164 = vmatpush3.bf16.msra.mxu0 %v178_v1  ;;  %176 = vmatpush3.bf16.msra.mxu1 %v178_v1 }
   0xa   :  { %166 = vmatmul.mubr.msk.bf16.vlgmr.msra.gmra.mxu0 %vm44_vm0, %v25_v12  ;;  %170 = vmatmul.mubr.msk.bf16.vlgmr.msra.gmra.mxu1 %vm44_vm0, %v27_v13 }
  0xca   :  { %v167_v15 = vpop.f32.mrf.mxu0  ;;  %v171_v16 = vpop.f32.mrf.mxu1 }
  0xcb   :  { %v130_v17 = vadd.f32 %v167_v15, %v154_v14  ;;  %v134_v18 = vadd.f32 %v171_v16, %v154_v14 }
  0xcc   :  { %v91_v19 = vpop.f32.mrf.mxu0  ;;  %v107_v20 = vpop.f32.mrf.mxu1 }
  0xcd   :  { %138 = vst [vmem:[%s263_s3 + $0x10] sm:$0xff] %v130_v17  ;;  %142 = vst [vmem:[%s263_s3 + $0x30] sm:$0xff] %v134_v18  ;;  %v128_v21 = vadd.f32 %v154_v14, %v91_v19  ;;  %v132_v22 = vadd.f32 %v154_v14, %v107_v20 }
  0xce   :  { %v168_v23 = vpop.f32.mrf.mxu0  ;;  %v172_v24 = vpop.f32.mrf.mxu1 }
  0xcf   :  { %136 = vst [vmem:[%s263_s3] sm:$0xff] %v128_v21  ;;  %140 = vst [vmem:[%s263_s3 + $0x20] sm:$0xff] %v132_v22  ;;  %v131_v25 = vadd.f32 %v168_v23, %v154_v14  ;;  %v135_v26 = vadd.f32 %v172_v24, %v154_v14 }
  0xd0   :  { %v94_v27 = vpop.f32.mrf.mxu0  ;;  %v110_v28 = vpop.f32.mrf.mxu1 }
  0xd1   :  { %139 = vst [vmem:[%s263_s3 + $0x18] sm:$0xff] %v131_v25  ;;  %143 = vst [vmem:[%s263_s3 + $0x38] sm:$0xff] %v135_v26  ;;  %v129_v29 = vadd.f32 %v154_v14, %v94_v27  ;;  %v133_v30 = vadd.f32 %v154_v14, %v110_v28 }
  0xd3   :  { %137 = vst [vmem:[%s263_s3 + $0x8] sm:$0xff] %v129_v29  ;;  %141 = vst [vmem:[%s263_s3 + $0x28] sm:$0xff] %v133_v30 }

// kernel: rcnn_forward.13
= control target key start
LH: loop header
LB: loop body
LE: loop exit
PB: predicated region body
PF: predicated region fallthrough
CT: control target
= control target key end

     0   :  { %s793_s24 = smov 0   ;;  %s887_s0 = inlined_call_operand.vmem [shape: f32[8,8,32], index: 0, kind: input, shape index: {}]   ;;  %s888_s1 = inlined_call_operand.vmem [shape: f32[8,8,32], index: 1, kind: input, shape index: {}]   ;;  %s889_s2 = inlined_call_operand.vmem [shape: f32[8,8,32], index: 2, kind: input, shape index: {}]   ;;  %s890_s3 = inlined_call_operand.vmem [shape: f32[32,4], index: 3, kind: input, shape index: {}]   ;;  %s891_s4 = inlined_call_operand.vmem [shape: f32[32,4], index: 4, kind: input, shape index: {}]   ;;  %s892_s5 = inlined_call_operand.vmem [shape: f32[32,4], index: 5, kind: input, shape index: {}]   ;;  %s893_s6 = inlined_call_operand.vmem [shape: f32[1,4], index: 6, kind: input, shape index: {}]   ;;  %s894_s7 = inlined_call_operand.vmem [shape: f32[8,4], index: 7, kind: output, shape index: {}]  }
   0x1 LB: > { %s799_s25 = sadd.s32 4294967295, %s748_s24   ;;  %p668_p0 = scmp.ge.s32.totalorder %s748_s24, 1  ;;  %s748_s24 = sphi %s793_s24, %s17_s24  }
   0x2   : > { %p255_p1 = scmp.lt.s32.totalorder %s748_s24, 3 }
   0x4   : > { %p256_p2 = pnand %p668_p0, %p255_p1 }
   0x5   : > { %s669_s26 = sshll.u32 (!%p256_p2), %s799_s25, 2  ;;  %p675_p4 = scmp.ne.s32.totalorder (!%p256_p2), %s799_s25, 0 }
   0x6   : > { %259 = sbr.rel (%p256_p2) target bundleno = 248 (0xf8), region = 48  ;;  %p293_p3 = scmp.lt.s32.totalorder (!%p256_p2), %s669_s26, 7 }
   0xb   : > { %s896_s26 = smov (!%p293_p3, %s669_s26), 7  ;;  %313 = sbr.rel (%p675_p4) target bundleno = 19 (0x13), region = 52 }
   0xc   : > { %s670_s27 = sshll.u32 %s896_s26, 3 }
   0xd   : > { %s296_s30 = scalar_lea.vmem %s887_s0, %s670_s27  ;;  %s302_s10 = scalar_lea.vmem %s888_s1, %s670_s27 }
   0xe   : > { %s813_s13 = scalar_lea.vmem %s889_s2, %s670_s27 }
  0x10   : > { %vm314_vm0 = vcmask 261120   ;;  %v750_v0 = vmov -inf  }
  0x11   : > { %315 = vst.msk [vmem:[#allocation2] sm:$0xff] %vm314_vm0, %v750_v0  ;;  %316 = vst.msk [vmem:[#allocation3] sm:$0xff] %vm314_vm0, %v750_v0 }
  0x12   : > { %317 = vst.msk [vmem:[#allocation4] sm:$0xff] %vm314_vm0, %v750_v0 }
  0x13 PF: > { %v319_v1 = vld [vmem:[%s296_s30] sm:$0xff]  ;;  %v320_v2 = vld [vmem:[%s296_s30 + $0x8] sm:$0xff]  ;;  %vm323_vm1 = vcmask 261120   ;;  %v321_v3 = vld [vmem:[%s296_s30 + $0x10] sm:$0xff]  ;;  %p676_p5 = scmp.ne.s32.totalorder %s799_s25, 1 }
  0x14   : > { %v322_v4 = vld [vmem:[%s296_s30 + $0x18] sm:$0xff]  ;;  %v324_v5 = vsel %vm323_vm1, %v319_v1, -inf  ;;  %v325_v6 = vsel %vm323_vm1, %v320_v2, -inf  ;;  %v326_v7 = vsel %vm323_vm1, %v321_v3, -inf  ;;  %v334_v10 = vld [vmem:[%s302_s10] sm:$0xff]  ;;  %v335_v11 = vld [vmem:[%s302_s10 + $0x8] sm:$0xff] }
  0x15   : > { %v327_v8 = vsel %vm323_vm1, %v322_v4, -inf  ;;  %v328_v9 = vmax.f32 %v324_v5, %v325_v6  ;;  %v336_v12 = vld [vmem:[%s302_s10 + $0x10] sm:$0xff]  ;;  %v337_v15 = vld [vmem:[%s302_s10 + $0x18] sm:$0xff]  ;;  %v338_v16 = vsel %vm323_vm1, %v334_v10, -inf  ;;  %v339_v17 = vsel %vm323_vm1, %v335_v11, -inf  ;;  %v348_v19 = vld [vmem:[%s813_s13] sm:$0xff] }
  0x16   : > { %v329_v14 = vmax.f32 %v326_v7, %v327_v8  ;;  %v340_v18 = vsel %vm323_vm1, %v336_v12, -inf  ;;  %v341_v20 = vsel %vm323_vm1, %v337_v15, -inf  ;;  %v342_v21 = vmax.f32 %v338_v16, %v339_v17  ;;  %v349_v22 = vld [vmem:[%s813_s13 + $0x8] sm:$0xff]  ;;  %v350_v23 = vld [vmem:[%s813_s13 + $0x10] sm:$0xff]  ;;  %v351_v24 = vld [vmem:[%s813_s13 + $0x18] sm:$0xff] }
  0x17   : > { %v352_v25 = vsel %vm323_vm1, %v348_v19, -inf  ;;  %v343_v27 = vmax.f32 %v340_v18, %v341_v20  ;;  %v353_v28 = vsel %vm323_vm1, %v349_v22, -inf  ;;  %v354_v29 = vsel %vm323_vm1, %v350_v23, -inf }
  0x18   : > { %v318_v13 = vld [vmem:[#allocation2] sm:$0xff]  ;;  %v330_v26 = vmax.f32 %v328_v9, %v329_v14  ;;  %v333_v30 = vld [vmem:[#allocation3] sm:$0xff]  ;;  %v355_v31 = vsel %vm323_vm1, %v351_v24, -inf  ;;  %v356_v32 = vmax.f32 %v352_v25, %v353_v28 }
  0x19   : > { %v344_v34 = vmax.f32 %v342_v21, %v343_v27  ;;  %v357_v35 = vmax.f32 %v354_v29, %v355_v31  ;;  %v347_v36 = vld [vmem:[#allocation4] sm:$0xff] }
  0x1a   : > { %v331_v33 = vmax.f32 %v318_v13, %v330_v26 }
  0x1b   : > { %v345_v37 = vmax.f32 %v333_v30, %v344_v34  ;;  %v358_v38 = vmax.f32 %v356_v32, %v357_v35  ;;  %364 = sbr.rel (%p676_p5) target bundleno = 248 (0xf8), region = 56 }
  0x1c   : > { %332 = vst.msk [vmem:[#allocation2] sm:$0xff] %vm323_vm1, %v331_v33 }
  0x1d   : > { %346 = vst.msk [vmem:[#allocation3] sm:$0xff] %vm323_vm1, %v345_v37  ;;  %v359_v39 = vmax.f32 %v347_v36, %v358_v38 }
  0x1f   : > { %360 = vst.msk [vmem:[#allocation4] sm:$0xff] %vm323_vm1, %v359_v39 }
  0x20   : > { %v378_v40 = vld [vmem:[%s891_s4 + $0x18] sm:$0xff]  ;;  %v751_v42 = vmov 0.0   ;;  %v377_v43 = vld [vmem:[%s891_s4 + $0x10] sm:$0xff]  ;;  %v376_v46 = vld [vmem:[%s891_s4 + $0x8] sm:$0xff]  ;;  %vm752_vm2 = vmmov 0   ;;  %vm611_vm3 = vcmask 31744  }
  0x21   : > { %v374_v41 = vld [vmem:[%s890_s3 + $0x18] sm:$0xff]  ;;  %698 = vmatprep.subr.mxu0 %v751_v42  ;;  %709 = vmatprep.subr.mxu1 %v751_v42  ;;  %v373_v44 = vld [vmem:[%s890_s3 + $0x10] sm:$0xff]  ;;  %v372_v47 = vld [vmem:[%s890_s3 + $0x8] sm:$0xff] }
  0x22   : > { %699 = vmatpush3.msra.mxu0 %v378_v40  ;;  %710 = vmatpush3.msra.mxu1 %v374_v41  ;;  %v375_v49 = vld [vmem:[%s891_s4] sm:$0xff]  ;;  %v528_v53 = vld [vmem:[%s892_s5 + $0x18] sm:$0xff]  ;;  %v527_v54 = vld [vmem:[%s892_s5 + $0x10] sm:$0xff] }
  0x23   : > { %700 = vmatprep.subr.mxu0 %v751_v42  ;;  %711 = vmatprep.subr.mxu1 %v751_v42  ;;  %v365_v48 = vld [vmem:[#allocation2] sm:$0xff]  ;;  %v526_v56 = vld [vmem:[%s892_s5 + $0x8] sm:$0xff] }
  0x24   : > { %v367_v45 = vld [vmem:[#allocation3] sm:$0xff]  ;;  %701 = vmatpush3.msra.mxu0 %v377_v43  ;;  %712 = vmatpush3.msra.mxu1 %v373_v44  ;;  %v371_v51 = vld [vmem:[%s890_s3] sm:$0xff]  ;;  %v366_v52 = vmax.f32 %v365_v48, 0.0 }
  0x25   : > { %702 = vmatprep.subr.mxu0 %v751_v42  ;;  %713 = vmatprep.subr.mxu1 %v751_v42  ;;  %v368_v50 = vmax.f32 %v367_v45, 0.0  ;;  %v525_v57 = vld [vmem:[%s892_s5] sm:$0xff] }
  0x26   : > { %703 = vmatpush3.msra.mxu0 %v376_v46  ;;  %714 = vmatpush3.msra.mxu1 %v372_v47  ;;  %v369_v55 = vld [vmem:[#allocation4] sm:$0xff]  ;;  %v680_v1 = vld [vmem:[%s893_s6] ss:$0 sm:$0xff] }
  0x27   : > { %704 = vmatprep.subr.mxu0 %v751_v42  ;;  %706 = vmatprep.mubr.msk.f32.mxu0 %vm752_vm2, %v751_v42  ;;  %v370_v58 = vmax.f32 %v369_v55, 0.0 }
  0x28   : > { %705 = vmatpush3.msra.mxu0 %v375_v49  ;;  %715 = vmatprep.subr.mxu1 %v751_v42 }
  0x29   : > { %707 = vmatmul.mubr.msk.f32.vlgmr.msra.gmra.mxu0 %vm323_vm1, %v368_v50  ;;  %716 = vmatpush3.msra.mxu1 %v371_v51 }
  0x2a   : > { %717 = vmatprep.mubr.msk.f32.mxu1 %vm752_vm2, %v751_v42  ;;  %720 = vmatprep.subr.mxu0 %v751_v42 }
  0x2b   : > { %718 = vmatmul.mubr.msk.f32.vlgmr.msra.gmra.mxu1 %vm323_vm1, %v366_v52  ;;  %721 = vmatpush3.msra.mxu0 %v528_v53 }
  0x2c   : > { %722 = vmatprep.subr.mxu0 %v751_v42  ;;  %728 = vmatprep.mubr.msk.f32.mxu0 %vm752_vm2, %v751_v42 }
  0x2d   : > { %723 = vmatpush3.msra.mxu0 %v527_v54 }
  0x2e   : > { %724 = vmatprep.subr.mxu0 %v751_v42 }
  0x2f   : > { %725 = vmatpush3.msra.mxu0 %v526_v56 }
  0x30   : > { %726 = vmatprep.subr.mxu0 %v751_v42 }
  0x31   : > { %727 = vmatpush3.msra.mxu0 %v525_v57 }
  0x32   : > { %729 = vmatmul.mubr.msk.f32.vlgmr.msra.gmra.mxu0 %vm323_vm1, %v370_v58 }
  0xe9   : > { %v448_v59 = vpop.f32.mrf.mxu0 }
  0xeb   : > { %v521_v60 = vpop.f32.mrf.mxu1  ;;  %v708_v61 = vpop.f32.mrf.mxu0 }
  0xec   : > { %v522_v63 = vadd.f32 %v521_v60, %v448_v59 }
  0xed   : > { %v719_v62 = vpop.f32.mrf.mxu1 }
  0xf2   : > { %v598_v0 = vpop.f32.mrf.mxu0 }
  0xf3   : > { %v602_v2 = vadd.f32 %v598_v0, %v522_v63 }
  0xf4   : > { %v730_v3 = vpop.f32.mrf.mxu0 }
  0xf5   : > { %v610_v4 = vadd.f32 %v680_v1, %v602_v2 }
  0xf7   : > { %612 = vst.msk [vmem:[%s894_s7] sm:$0xff] %vm611_vm3, %v610_v4 }
  0xf8 PF: > { %s17_s24 = sadd.s32 1, %s748_s24  }
  0xf9   : > { %p14_p6 = scmp.ge.s32.totalorder %s17_s24, 4  }
  0xfb   :  { %16 = sbr.rel (!%p14_p6) target bundleno = 1 (0x1), region = 88 }

// kernel: rcnn_forward.9
= control target key start
LH: loop header
LB: loop body
LE: loop exit
PB: predicated region body
PF: predicated region fallthrough
CT: control target
= control target key end

     0   :  { %s1340_s18 = smov 0   ;;  %s1551_s0 = inlined_call_operand.vmem [shape: f32[8,8,128], index: 0, kind: input, shape index: {}]   ;;  %s1552_s1 = inlined_call_operand.vmem [shape: f32[8,8,128], index: 1, kind: input, shape index: {}]   ;;  %s1553_s2 = inlined_call_operand.vmem [shape: bf16[32,128], index: 2, kind: input, shape index: {}]   ;;  %s1554_s3 = inlined_call_operand.vmem [shape: bf16[32,128], index: 3, kind: input, shape index: {}]   ;;  %s1555_s4 = inlined_call_operand.vmem [shape: f32[8,8,32], index: 4, kind: output, shape index: {0}]   ;;  %s1556_s5 = inlined_call_operand.vmem [shape: f32[8,8,32], index: 5, kind: output, shape index: {1}]  }
   0x1 LB: > { %s1078_s19 = sadd.s32 4294967295, %s1302_s18   ;;  %p1082_p0 = scmp.ge.s32.totalorder %s1302_s18, 1  ;;  %s1302_s18 = sphi %s1340_s18, %s16_s18  }
   0x2   : > { %p208_p1 = scmp.lt.s32.totalorder %s1302_s18, 3 }
   0x4   : > { %p209_p2 = pnand %p1082_p0, %p208_p1 }
   0x5   : > { %s1083_s20 = sshll.u32 (!%p209_p2), %s1078_s19, 2  ;;  %s254_s21 = ssub.s32 (!%p209_p2), 1, %s1078_s19 }
   0x6   : > { %212 = sbr.rel (%p209_p2) target bundleno = 2803 (0xaf3), region = 36  ;;  %p249_p3 = scmp.lt.s32.totalorder (!%p209_p2), %s1083_s20, 7 }
   0x7   : > { %s1085_s22 = sshll.u32 (!%p209_p2), %s254_s21, 2  ;;  %p1091_p5 = scmp.ne.s32.totalorder (!%p209_p2), %s1078_s19, 0 }
   0x8   : > { %p256_p4 = scmp.lt.s32.totalorder (!%p209_p2), %s1085_s22, 7 }
   0xb   : > { %s1558_s20 = smov (!%p249_p3, %s1083_s20), 7  ;;  %s1560_s22 = smov (!%p256_p4, %s1085_s22), 7 }
   0xc   : > { %s1084_s23 = sshll.u32 %s1558_s20, 3  ;;  %s1086_s27 = sshll.u32 %s1560_s22, 3 }
   0xd   : > { %s1351_s26 = scalar_lea.vmem %s1551_s0, %s1084_s23  ;;  %s1356_s30 = scalar_lea.vmem %s1552_s1, %s1086_s27 }
   0xe   : > { %s1361_s8 = scalar_lea.vmem %s1555_s4, %s1084_s23  ;;  %s1366_s11 = scalar_lea.vmem %s1556_s5, %s1086_s27 }
   0xf   : > { %280 = sbr.rel (%p1091_p5) target bundleno = 23 (0x17), region = 40 }
  0x14   : > { %vm281_vm0 = vcmask 261120   ;;  %v1304_v0 = vmov 0.0  }
  0x15   : > { %282 = vst.msk [vmem:[#allocation2] sm:$0xff] %vm281_vm0, %v1304_v0  ;;  %283 = vst.msk [vmem:[#allocation3] sm:$0xff] %vm281_vm0, %v1304_v0 }
  0x16   : > { %284 = vst.msk [vmem:[#allocation4] sm:$0xff] %vm281_vm0, %v1304_v0  ;;  %285 = vst.msk [vmem:[#allocation5] sm:$0xff] %vm281_vm0, %v1304_v0 }
  0x17 PF: > { %v1371_v1 = vld [vmem:[%s1553_s2 + $0x8] sm:$0xff]   ;;  %v1305_v2 = vmov 0.0   ;;  %v1384_v4 = vld [vmem:[%s1553_s2] sm:$0xff]   ;;  %vm1306_vm1 = vmmov 0   ;;  %s1307_s21 = smov 32   ;;  %vm312_vm2 = vcmask 261120  }
  0x18   : > { %1150 = vmatprep.subr.bf16.mxu0 %v1305_v2  ;;  %1158 = vmatprep.subr.bf16.mxu1 %v1305_v2  ;;  %v1378_v3 = vld [vmem:[%s1554_s3 + $0x8] sm:$0xff]   ;;  %v1393_v5 = vld [vmem:[%s1554_s3] sm:$0xff]   ;;  %v1096_v13 = vld [vmem:[%s1356_s30 + $0x18] sm:$0xff]  ;;  %s1308_s22 = smov 64   ;;  %s1309_s23 = smov 96  }
  0x19   : > { %1151 = vmatpush3.bf16.msra.mxu0 %v1371_v1  ;;  %1154 = vmatprep.mubr.msk.bf16.mxu0 %vm1306_vm1, %v1305_v2  ;;  %v298_v12 = vld [vmem:[%s1351_s26] sm:$0xff]  ;;  %v1102_v56 = vld [vmem:[%s1351_s26 + $0x8] sm:$0xff]  ;;  %v1106_v60 = vld [vmem:[%s1356_s30 + $0x10] sm:$0xff] }
  0x1a   : > { %1159 = vmatpush3.bf16.msra.mxu1 %v1378_v3  ;;  %1152 = vmatprep.subr.bf16.mxu0 %v1305_v2 }
  0x1b   : > { %1160 = vmatprep.subr.bf16.mxu1 %v1305_v2  ;;  %1162 = vmatprep.mubr.msk.bf16.mxu1 %vm1306_vm1, %v1305_v2 }
  0x1c   : > { %v294_v6 = vld [vmem:[#allocation2] sm:$0xff]  ;;  %v295_v8 = vld [vmem:[#allocation3] sm:$0xff] }
  0x1d   : > { %v296_v7 = vld [vmem:[#allocation4] sm:$0xff]  ;;  %v299_v9 = vpack.c.bf16 %v294_v6, %v294_v6  ;;  %365 = vrot.lane.b32.xlu1 %v295_v8, %s1307_s21  ;;  %1153 = vmatpush3.bf16.msra.mxu0 %v1384_v4  ;;  %v297_v11 = vld [vmem:[#allocation5] sm:$0xff] }
  0x1e   : > { %v392_v10 = vpack.c.bf16 %v296_v7, %v296_v7  ;;  %1161 = vmatpush3.bf16.msra.mxu1 %v1393_v5  ;;  %1166 = vmatprep.subr.bf16.mxu0 %v1305_v2 }
  0x1f   : > { %1174 = vmatprep.subr.bf16.mxu1 %v1305_v2 }
  0x20   : > { %1155 = vmatmul.mubr.msk.bf16.vlgmr.msra.gmra.mxu0 %vm312_vm2, %v299_v9 }
  0x21   : > { %457 = vrot.lane.b32.xlu1 %v297_v11, %s1307_s21  ;;  %1163 = vmatmul.mubr.msk.bf16.vlgmr.msra.gmra.mxu1 %vm312_vm2, %v392_v10 }
  0x22   : > { %1167 = vmatpush3.bf16.msra.mxu0 %v1371_v1  ;;  %1175 = vmatpush3.bf16.msra.mxu1 %v1378_v3 }
  0x23   : > { %1168 = vmatprep.subr.bf16.mxu0 %v1305_v2  ;;  %1170 = vmatprep.mubr.msk.bf16.mxu0 %vm1306_vm1, %v1305_v2 }
  0x24   : > { %1176 = vmatprep.subr.bf16.mxu1 %v1305_v2  ;;  %1178 = vmatprep.mubr.msk.bf16.mxu1 %vm1306_vm1, %v1305_v2 }
  0x26   : > { %1169 = vmatpush3.bf16.msra.mxu0 %v1384_v4  ;;  %1177 = vmatpush3.bf16.msra.mxu1 %v1393_v5 }
  0x27   : > { %1182 = vmatprep.subr.bf16.mxu0 %v1305_v2  ;;  %1190 = vmatprep.subr.bf16.mxu1 %v1305_v2 }
  0x8f   : > { %v366_v38 = vpop.permute.xlu1 %365 }
  0x93   : > { %v458_v40 = vpop.permute.xlu1 %457 }
  0xe0   : > { %v350_v14 = vpop.f32.mrf.mxu0 }
  0xe1   : > { %v356_v15 = vadd.f32 %v350_v14, %v298_v12  ;;  %v442_v16 = vpop.f32.mrf.mxu1 }
  0xe2   : > { %v448_v17 = vadd.f32 %v1096_v13, %v442_v16  ;;  %v1156_v18 = vpop.f32.mrf.mxu0 }
  0xe3   : > { %1232 = vtanh.f32 %v356_v15  ;;  %v1164_v19 = vpop.f32.mrf.mxu1  ;;  %v1095_v26 = vmul.f32 -1.442695, %v356_v15 }
  0xe4   : > { %v353_v20 = vpop.f32.mrf.mxu0  ;;  %1234 = vtanh.f32 %v448_v17  ;;  %v1100_v27 = vmul.f32 -1.442695, %v448_v17 }
  0xe5   : > { %v445_v21 = vpop.f32.mrf.mxu1  ;;  %1236 = vpow2.f32 %v1095_v26 }
  0xe6   : > { %v1157_v22 = vpop.f32.mrf.mxu0  ;;  %1238 = vpow2.f32 %v1100_v27 }
  0xe7   : > { %v1165_v23 = vpop.f32.mrf.mxu1 }
  0xf0   : > { %v1233_v24 = vpop.eup %1232 }
  0xf1   : > { %370 = vrot.lane.b32.xlu0 %v1233_v24, %s1308_s22  ;;  %v1235_v25 = vpop.eup %1234 }
  0xf2   : > { %v1237_v28 = vpop.eup %1236 }
  0xf3   : > { %v360_v29 = vadd.f32 1.0, %v1237_v28  ;;  %v1239_v30 = vpop.eup %1238 }
  0xf4   : > { %v452_v31 = vadd.f32 1.0, %v1239_v30 }
  0xf5   : > { %462 = vrot.lane.b32.xlu0 %v1235_v25, %s1308_s22  ;;  %1240 = vrcp.f32 %v360_v29 }
  0xf6   : > { %1242 = vrcp.f32 %v452_v31 }
 0x102   : > { %v1241_v32 = vpop.eup %1240 }
 0x103   : > { %v1243_v35 = vpop.eup %1242  ;;  %v368_v39 = vmul.f32 %v1241_v32, %v366_v38 }
 0x104   : > { %v460_v43 = vmul.f32 %v1243_v35, %v458_v40 }
 0x163   : > { %v371_v33 = vpop.permute.xlu0 %370 }
 0x164   : > { %v373_v34 = vmul.f32 %v1241_v32, %v371_v33 }
 0x166   : > { %375 = vrot.lane.b32.xlu0 %v373_v34, %s1307_s21 }
 0x167   : > { %v463_v36 = vpop.permute.xlu0 %462 }
 0x168   : > { %v465_v37 = vmul.f32 %v1243_v35, %v463_v36 }
 0x16a   : > { %467 = vrot.lane.b32.xlu1 %v465_v37, %s1307_s21 }
 0x1d8   : > { %v376_v41 = vpop.permute.xlu0 %375 }
 0x1d9   : > { %v1424_v42 = vadd.f32 %v376_v41, %v368_v39 }
 0x1db   : > { %1244 = vtanh.f32 %v1424_v42 }
 0x1dc   : > { %v468_v44 = vpop.permute.xlu1 %467 }
 0x1dd   : > { %v1427_v45 = vadd.f32 %v468_v44, %v460_v43 }
 0x1df   : > { %1246 = vtanh.f32 %v1427_v45 }
 0x1e8   : > { %v1245_v46 = vpop.eup %1244 }
 0x1e9   : > { %381 = vrot.lane.b32.xlu0 %v1245_v46, %s1308_s22 }
 0x1ec   : > { %v1247_v47 = vpop.eup %1246 }
 0x1ed   : > { %473 = vrot.lane.b32.xlu1 %v1247_v47, %s1308_s22 }
 0x25b   : > { %v382_v48 = vpop.permute.xlu0 %381 }
 0x25c   : > { %v1432_v49 = vmul.f32 %v1241_v32, %v382_v48 }
 0x25e   : > { %v485_v50 = vpack.c.bf16 %v1432_v49, %v1432_v49 }
 0x25f   : > { %v474_v51 = vpop.permute.xlu1 %473 }
 0x260   : > { %v1436_v52 = vmul.f32 %v1243_v35, %v474_v51  ;;  %487 = vrot.lane.b32.xlu0 %v485_v50, %s1307_s21 }
 0x262   : > { %v565_v53 = vpack.c.bf16 %v1436_v52, %v1436_v52 }
 0x264   : > { %567 = vrot.lane.b32.xlu1 %v565_v53, %s1307_s21 }
 0x2d2   : > { %v488_v54 = vpop.permute.xlu0 %487 }
 0x2d3   : > { %1171 = vmatmul.mubr.msk.bf16.vlgmr.msra.gmra.mxu0 %vm312_vm2, %v488_v54 }
 0x2d4   : > { %1183 = vmatpush3.bf16.msra.mxu0 %v1371_v1  ;;  %1186 = vmatprep.mubr.msk.bf16.mxu0 %vm1306_vm1, %v1305_v2 }
 0x2d5   : > { %1184 = vmatprep.subr.bf16.mxu0 %v1305_v2 }
 0x2d6   : > { %v568_v55 = vpop.permute.xlu1 %567 }
 0x2d7   : > { %1179 = vmatmul.mubr.msk.bf16.vlgmr.msra.gmra.mxu1 %vm312_vm2, %v568_v55 }
 0x2d8   : > { %1191 = vmatpush3.bf16.msra.mxu1 %v1378_v3  ;;  %1185 = vmatpush3.bf16.msra.mxu0 %v1384_v4 }
 0x2d9   : > { %1192 = vmatprep.subr.bf16.mxu1 %v1305_v2  ;;  %1194 = vmatprep.mubr.msk.bf16.mxu1 %vm1306_vm1, %v1305_v2 }
 0x2da   : > { %1198 = vmatprep.subr.bf16.mxu0 %v1305_v2 }
 0x2dc   : > { %1193 = vmatpush3.bf16.msra.mxu1 %v1393_v5 }
 0x2dd   : > { %1206 = vmatprep.subr.bf16.mxu1 %v1305_v2 }
 0x393   : > { %v526_v57 = vpop.f32.mrf.mxu0 }
 0x394   : > { %v532_v58 = vadd.f32 %v1102_v56, %v526_v57 }
 0x395   : > { %v1172_v59 = vpop.f32.mrf.mxu0 }
 0x396   : > { %1248 = vtanh.f32 %v532_v58  ;;  %v1104_v11 = vmul.f32 -1.442695, %v532_v58 }
 0x397   : > { %v529_v61 = vpop.f32.mrf.mxu0  ;;  %v606_v62 = vpop.f32.mrf.mxu1 }
 0x398   : > { %v612_v63 = vadd.f32 %v1106_v60, %v606_v62 }
 0x399   : > { %v1173_v0 = vpop.f32.mrf.mxu0  ;;  %v1180_v6 = vpop.f32.mrf.mxu1 }
 0x39a   : > { %1250 = vtanh.f32 %v612_v63  ;;  %v1108_v12 = vmul.f32 -1.442695, %v612_v63 }
 0x39b   : > { %v609_v7 = vpop.f32.mrf.mxu1  ;;  %1252 = vpow2.f32 %v1104_v11 }
 0x39c   : > { %1254 = vpow2.f32 %v1108_v12 }
 0x39d   : > { %v1181_v8 = vpop.f32.mrf.mxu1 }
 0x3a3   : > { %v1249_v9 = vpop.eup %1248 }
 0x3a4   : > { %542 = vrot.lane.b32.xlu0 %v1249_v9, %s1308_s22 }
 0x3a7   : > { %v1251_v10 = vpop.eup %1250 }
 0x3a8   : > { %622 = vrot.lane.b32.xlu1 %v1251_v10, %s1308_s22  ;;  %v1253_v13 = vpop.eup %1252 }
 0x3a9   : > { %v536_v14 = vadd.f32 1.0, %v1253_v13  ;;  %v1255_v15 = vpop.eup %1254 }
 0x3aa   : > { %v616_v16 = vadd.f32 1.0, %v1255_v15 }
 0x3ab   : > { %1256 = vrcp.f32 %v536_v14 }
 0x3ac   : > { %1258 = vrcp.f32 %v616_v16 }
 0x3b8   : > { %v1257_v17 = vpop.eup %1256 }
 0x3b9   : > { %v1259_v20 = vpop.eup %1258  ;;  %v540_v23 = vmul.f32 %v1257_v17, %v1424_v42  ;;  %v1114_v42 = vld [vmem:[%s1356_s30 + $0x8] sm:$0xff] }
 0x3ba   : > { %v620_v26 = vmul.f32 %v1259_v20, %v1427_v45 }
 0x416   : > { %v543_v18 = vpop.permute.xlu0 %542 }
 0x417   : > { %v545_v19 = vmul.f32 %v1257_v17, %v543_v18 }
 0x419   : > { %547 = vrot.lane.b32.xlu0 %v545_v19, %s1307_s21  ;;  %v1118_v19 = vld [vmem:[%s1351_s26 + $0x18] sm:$0xff] }
 0x41a   : > { %v623_v21 = vpop.permute.xlu1 %622 }
 0x41b   : > { %v625_v22 = vmul.f32 %v1259_v20, %v623_v21 }
 0x41d   : > { %627 = vrot.lane.b32.xlu1 %v625_v22, %s1307_s21 }
 0x48b   : > { %v548_v24 = vpop.permute.xlu0 %547 }
 0x48c   : > { %v1463_v25 = vadd.f32 %v548_v24, %v540_v23  ;;  %v883_v23 = vld [vmem:[%s1356_s30] sm:$0xff] }
 0x48e   : > { %1260 = vtanh.f32 %v1463_v25 }
 0x48f   : > { %v628_v27 = vpop.permute.xlu1 %627 }
 0x490   : > { %v1467_v28 = vadd.f32 %v628_v27, %v620_v26 }
 0x492   : > { %1262 = vtanh.f32 %v1467_v28 }
 0x49b   : > { %v1261_v29 = vpop.eup %1260 }
 0x49c   : > { %553 = vrot.lane.b32.xlu0 %v1261_v29, %s1308_s22 }
 0x49f   : > { %v1263_v30 = vpop.eup %1262 }
 0x4a0   : > { %633 = vrot.lane.b32.xlu1 %v1263_v30, %s1308_s22 }
 0x50e   : > { %v554_v31 = vpop.permute.xlu0 %553 }
 0x50f   : > { %v1472_v32 = vmul.f32 %v1257_v17, %v554_v31 }
 0x511   : > { %v645_v33 = vpack.c.bf16 %v1472_v32, %v1472_v32 }
 0x512   : > { %v634_v34 = vpop.permute.xlu1 %633 }
 0x513   : > { %v1476_v35 = vmul.f32 %v1259_v20, %v634_v34  ;;  %647 = vrot.lane.b32.xlu0 %v645_v33, %s1307_s21 }
 0x515   : > { %v725_v36 = vpack.c.bf16 %v1476_v35, %v1476_v35 }
 0x517   : > { %727 = vrot.lane.b32.xlu1 %v725_v36, %s1307_s21 }
 0x585   : > { %v648_v37 = vpop.permute.xlu0 %647 }
 0x586   : > { %1187 = vmatmul.mubr.msk.bf16.vlgmr.msra.gmra.mxu0 %vm312_vm2, %v648_v37 }
 0x587   : > { %1199 = vmatpush3.bf16.msra.mxu0 %v1371_v1  ;;  %1202 = vmatprep.mubr.msk.bf16.mxu0 %vm1306_vm1, %v1305_v2  ;;  %v1110_v1 = vld [vmem:[%s1351_s26 + $0x10] sm:$0xff] }
 0x588   : > { %1200 = vmatprep.subr.bf16.mxu0 %v1305_v2 }
 0x589   : > { %v728_v38 = vpop.permute.xlu1 %727 }
 0x58a   : > { %1195 = vmatmul.mubr.msk.bf16.vlgmr.msra.gmra.mxu1 %vm312_vm2, %v728_v38 }
 0x58b   : > { %1207 = vmatpush3.bf16.msra.mxu1 %v1378_v3  ;;  %1201 = vmatpush3.bf16.msra.mxu0 %v1384_v4 }
 0x58c   : > { %1208 = vmatprep.subr.bf16.mxu1 %v1305_v2  ;;  %1210 = vmatprep.mubr.msk.bf16.mxu1 %vm1306_vm1, %v1305_v2 }
 0x58f   : > { %1209 = vmatpush3.bf16.msra.mxu1 %v1393_v5 }
 0x646   : > { %v686_v39 = vpop.f32.mrf.mxu0 }
 0x647   : > { %v692_v40 = vadd.f32 %v1110_v1, %v686_v39 }
 0x648   : > { %v1188_v41 = vpop.f32.mrf.mxu0 }
 0x649   : > { %1264 = vtanh.f32 %v692_v40  ;;  %v1112_v5 = vmul.f32 -1.442695, %v692_v40 }
 0x64a   : > { %v689_v43 = vpop.f32.mrf.mxu0  ;;  %v766_v44 = vpop.f32.mrf.mxu1 }
 0x64b   : > { %v772_v45 = vadd.f32 %v1114_v42, %v766_v44 }
 0x64c   : > { %v1189_v46 = vpop.f32.mrf.mxu0  ;;  %v1196_v3 = vpop.f32.mrf.mxu1 }
 0x64d   : > { %1266 = vtanh.f32 %v772_v45  ;;  %v1116_v50 = vmul.f32 -1.442695, %v772_v45 }
 0x64e   : > { %v769_v4 = vpop.f32.mrf.mxu1  ;;  %1268 = vpow2.f32 %v1112_v5 }
 0x64f   : > { %1270 = vpow2.f32 %v1116_v50 }
 0x650   : > { %v1197_v47 = vpop.f32.mrf.mxu1 }
 0x656   : > { %v1265_v48 = vpop.eup %1264 }
 0x657   : > { %702 = vrot.lane.b32.xlu0 %v1265_v48, %s1308_s22 }
 0x65a   : > { %v1267_v2 = vpop.eup %1266 }
 0x65b   : > { %782 = vrot.lane.b32.xlu1 %v1267_v2, %s1308_s22  ;;  %v1269_v51 = vpop.eup %1268 }
 0x65c   : > { %v696_v53 = vadd.f32 1.0, %v1269_v51  ;;  %v1271_v54 = vpop.eup %1270 }
 0x65d   : > { %v776_v55 = vadd.f32 1.0, %v1271_v54 }
 0x65e   : > { %1272 = vrcp.f32 %v696_v53 }
 0x65f   : > { %1274 = vrcp.f32 %v776_v55 }
 0x66b   : > { %v1273_v56 = vpop.eup %1272 }
 0x66c   : > { %v1275_v59 = vpop.eup %1274  ;;  %v700_v62 = vmul.f32 %v1273_v56, %v1463_v25 }
 0x66d   : > { %v780_v6 = vmul.f32 %v1275_v59, %v1467_v28 }
 0x6c9   : > { %v703_v57 = vpop.permute.xlu0 %702 }
 0x6ca   : > { %v705_v58 = vmul.f32 %v1273_v56, %v703_v57 }
 0x6cc   : > { %707 = vrot.lane.b32.xlu0 %v705_v58, %s1307_s21 }
 0x6cd   : > { %v783_v60 = vpop.permute.xlu1 %782 }
 0x6ce   : > { %v785_v61 = vmul.f32 %v1275_v59, %v783_v60 }
 0x6d0   : > { %787 = vrot.lane.b32.xlu1 %v785_v61, %s1307_s21 }
 0x73e   : > { %v708_v63 = vpop.permute.xlu0 %707 }
 0x73f   : > { %v710_v0 = vadd.f32 %v708_v63, %v700_v62 }
 0x741   : > { %1276 = vtanh.f32 %v710_v0 }
 0x742   : > { %v788_v7 = vpop.permute.xlu1 %787 }
 0x743   : > { %v790_v8 = vadd.f32 %v788_v7, %v780_v6 }
 0x745   : > { %1278 = vtanh.f32 %v790_v8 }
 0x74e   : > { %v1277_v9 = vpop.eup %1276 }
 0x74f   : > { %713 = vrot.lane.b32.xlu0 %v1277_v9, %s1308_s22 }
 0x752   : > { %v1279_v10 = vpop.eup %1278 }
 0x753   : > { %793 = vrot.lane.b32.xlu1 %v1279_v10, %s1308_s22 }
 0x7c1   : > { %v714_v11 = vpop.permute.xlu0 %713 }
 0x7c2   : > { %v716_v12 = vmul.f32 %v1273_v56, %v714_v11 }
 0x7c4   : > { %v805_v13 = vpack.c.bf16 %v716_v12, %v716_v12 }
 0x7c5   : > { %v794_v14 = vpop.permute.xlu1 %793 }
 0x7c6   : > { %v796_v15 = vmul.f32 %v1275_v59, %v794_v14  ;;  %807 = vrot.lane.b32.xlu0 %v805_v13, %s1307_s21 }
 0x7c8   : > { %v884_v16 = vpack.c.bf16 %v796_v15, %v796_v15 }
 0x7ca   : > { %886 = vrot.lane.b32.xlu1 %v884_v16, %s1307_s21 }
 0x838   : > { %v808_v17 = vpop.permute.xlu0 %807 }
 0x839   : > { %1203 = vmatmul.mubr.msk.bf16.vlgmr.msra.gmra.mxu0 %vm312_vm2, %v808_v17 }
 0x83c   : > { %v887_v18 = vpop.permute.xlu1 %886 }
 0x83d   : > { %1211 = vmatmul.mubr.msk.bf16.vlgmr.msra.gmra.mxu1 %vm312_vm2, %v887_v18 }
 0x8f9   : > { %v846_v20 = vpop.f32.mrf.mxu0 }
 0x8fa   : > { %v852_v21 = vadd.f32 %v1118_v19, %v846_v20 }
 0x8fb   : > { %v1204_v22 = vpop.f32.mrf.mxu0 }
 0x8fc   : > { %1280 = vtanh.f32 %v852_v21  ;;  %v1120_v34 = vmul.f32 -1.442695, %v852_v21 }
 0x8fd   : > { %v849_v24 = vpop.f32.mrf.mxu0  ;;  %v925_v25 = vpop.f32.mrf.mxu1 }
 0x8fe   : > { %v931_v26 = vadd.f32 %v925_v25, %v883_v23 }
 0x8ff   : > { %v1205_v27 = vpop.f32.mrf.mxu0  ;;  %v1212_v28 = vpop.f32.mrf.mxu1 }
 0x900   : > { %1282 = vtanh.f32 %v931_v26  ;;  %v1123_v36 = vmul.f32 -1.442695, %v931_v26 }
 0x901   : > { %v928_v29 = vpop.f32.mrf.mxu1  ;;  %1284 = vpow2.f32 %v1120_v34 }
 0x902   : > { %1286 = vpow2.f32 %v1123_v36 }
 0x903   : > { %v1213_v30 = vpop.f32.mrf.mxu1 }
 0x909   : > { %v1281_v31 = vpop.eup %1280 }
 0x90a   : > { %862 = vrot.lane.b32.xlu0 %v1281_v31, %s1308_s22 }
 0x90d   : > { %v1283_v33 = vpop.eup %1282 }
 0x90e   : > { %941 = vrot.lane.b32.xlu1 %v1283_v33, %s1308_s22  ;;  %v1285_v37 = vpop.eup %1284 }
 0x90f   : > { %v856_v38 = vadd.f32 1.0, %v1285_v37  ;;  %v1287_v1 = vpop.eup %1286 }
 0x910   : > { %v935_v39 = vadd.f32 1.0, %v1287_v1 }
 0x911   : > { %1288 = vrcp.f32 %v856_v38 }
 0x912   : > { %1290 = vrcp.f32 %v935_v39 }
 0x91e   : > { %v1289_v40 = vpop.eup %1288 }
 0x91f   : > { %v1291_v43 = vpop.eup %1290  ;;  %v860_v46 = vmul.f32 %v1289_v40, %v710_v0 }
 0x920   : > { %v939_v47 = vmul.f32 %v1291_v43, %v790_v8 }
 0x97c   : > { %v863_v41 = vpop.permute.xlu0 %862 }
 0x97d   : > { %v865_v42 = vmul.f32 %v1289_v40, %v863_v41 }
 0x97f   : > { %867 = vrot.lane.b32.xlu0 %v865_v42, %s1307_s21 }
 0x980   : > { %v942_v44 = vpop.permute.xlu1 %941 }
 0x981   : > { %v944_v45 = vmul.f32 %v1291_v43, %v942_v44 }
 0x983   : > { %946 = vrot.lane.b32.xlu1 %v944_v45, %s1307_s21 }
 0x9f1   : > { %v868_v3 = vpop.permute.xlu0 %867 }
 0x9f2   : > { %v870_v4 = vadd.f32 %v868_v3, %v860_v46 }
 0x9f4   : > { %1292 = vtanh.f32 %v870_v4 }
 0x9f5   : > { %v947_v48 = vpop.permute.xlu1 %946 }
 0x9f6   : > { %v949_v2 = vadd.f32 %v947_v48, %v939_v47 }
 0x9f8   : > { %1294 = vtanh.f32 %v949_v2 }
 0xa01   : > { %v1293_v5 = vpop.eup %1292 }
 0xa02   : > { %873 = vrot.lane.b32.xlu0 %v1293_v5, %s1308_s22 }
 0xa05   : > { %v1295_v50 = vpop.eup %1294 }
 0xa06   : > { %952 = vrot.lane.b32.xlu1 %v1295_v50, %s1308_s22  ;;  %386 = vrot.lane.b32.xlu0 %v1432_v49, %s1307_s21 }
 0xa0a   : > { %478 = vrot.lane.b32.xlu1 %v1436_v52, %s1307_s21  ;;  %558 = vrot.lane.b32.xlu0 %v1472_v32, %s1307_s21 }
 0xa0e   : > { %638 = vrot.lane.b32.xlu1 %v1476_v35, %s1307_s21  ;;  %718 = vrot.lane.b32.xlu0 %v716_v12, %s1307_s21 }
 0xa12   : > { %798 = vrot.lane.b32.xlu1 %v796_v15, %s1307_s21 }
 0xa74   : > { %v874_v51 = vpop.permute.xlu0 %873 }
 0xa75   : > { %v876_v53 = vmul.f32 %v1289_v40, %v874_v51 }
 0xa77   : > { %878 = vrot.lane.b32.xlu0 %v876_v53, %s1307_s21 }
 0xa78   : > { %v953_v49 = vpop.permute.xlu1 %952  ;;  %v387_v52 = vpop.permute.xlu0 %386 }
 0xa79   : > { %v955_v54 = vmul.f32 %v1291_v43, %v953_v49  ;;  %389 = vst.msk [vmem:[%s1361_s8] sm:$0xff] %vm312_vm2, %v387_v52 }
 0xa7b   : > { %957 = vrot.lane.b32.xlu1 %v955_v54, %s1307_s21  ;;  %963 = vrot.lane.b32.xlu0 %v870_v4, %s1309_s23 }
 0xa7c   : > { %v479_v32 = vpop.permute.xlu1 %478  ;;  %v559_v35 = vpop.permute.xlu0 %558 }
 0xa7d   : > { %1101 = vst.msk [vmem:[%s1366_s11 + $0x18] sm:$0xff] %vm312_vm2, %v479_v32  ;;  %1105 = vst.msk [vmem:[%s1361_s8 + $0x8] sm:$0xff] %vm312_vm2, %v559_v35 }
 0xa7f   : > { %969 = vrot.lane.b32.xlu1 %v949_v2, %s1309_s23 }
 0xa80   : > { %v639_v55 = vpop.permute.xlu1 %638  ;;  %v719_v56 = vpop.permute.xlu0 %718 }
 0xa81   : > { %1109 = vst.msk [vmem:[%s1366_s11 + $0x10] sm:$0xff] %vm312_vm2, %v639_v55  ;;  %1113 = vst.msk [vmem:[%s1361_s8 + $0x10] sm:$0xff] %vm312_vm2, %v719_v56 }
 0xa84   : > { %v799_v57 = vpop.permute.xlu1 %798 }
 0xa85   : > { %1117 = vst.msk [vmem:[%s1366_s11 + $0x8] sm:$0xff] %vm312_vm2, %v799_v57 }
 0xae9   : > { %v879_v58 = vpop.permute.xlu0 %878 }
 0xaea   : > { %1121 = vst.msk [vmem:[%s1361_s8 + $0x18] sm:$0xff] %vm312_vm2, %v879_v58  ;;  %961 = vst.msk [vmem:[#allocation2] sm:$0xff] %vm312_vm2, %v879_v58 }
 0xaed   : > { %v958_v59 = vpop.permute.xlu1 %957  ;;  %v964_v60 = vpop.permute.xlu0 %963 }
 0xaee   : > { %960 = vst.msk [vmem:[%s1366_s11] sm:$0xff] %vm312_vm2, %v958_v59  ;;  %967 = vst.msk [vmem:[#allocation4] sm:$0xff] %vm312_vm2, %v958_v59 }
 0xaef   : > { %966 = vst.msk [vmem:[#allocation3] sm:$0xff] %vm312_vm2, %v964_v60 }
 0xaf1   : > { %v970_v61 = vpop.permute.xlu1 %969 }
 0xaf2   : > { %972 = vst.msk [vmem:[#allocation5] sm:$0xff] %vm312_vm2, %v970_v61 }
 0xaf3 PF: > { %s16_s18 = sadd.s32 1, %s1302_s18  }
 0xaf4   : > { %p13_p6 = scmp.ge.s32.totalorder %s16_s18, 4  }
 0xaf6   :  { %15 = sbr.rel (!%p13_p6) target bundleno = 1 (0x1), region = 97 }

</bundles_post_ra>
